<compile_context>
chip_gen: v7x
topology: tpu7x:2x2x1
jax: 0.10.0
libtpu: 0.0.40
codegen_flags: <defaults>
</compile_context>

<pallas_src>
import functools

import jax
import jax.numpy as jnp
from jax import lax
from jax.experimental import pallas as pl
from jax.experimental.pallas import tpu as pltpu

# ---------------------------------------------------------------------------
# Compile-time model dimensions (synthetic stand-in for bert-base-chinese).
# ---------------------------------------------------------------------------
HIDDEN = 32
HEADS = 4
HEAD_DIM = HIDDEN // HEADS
LAYERS = 2
INTER = 64
VOCAB = 30
VOCAB_PAD = 128          # lane-dense classifier / softmax / CE
MAX_POS = 16
EMB_ROWS = 32            # word-embedding rows padded (VOCAB=30 -> 32)
NEG = -1e9
IGNORE = -100

# per-layer bf16 GEMM slab layout: (LAYERS, WL_ROWS, WL_LANES) = [wqkv|wo|w1|w2]
OFF_WQKV = 0
OFF_WO = OFF_WQKV + 3 * HIDDEN    # 96
OFF_W1 = OFF_WO + HIDDEN          # 128
OFF_W2 = OFF_W1 + INTER           # 192
WL_LANES = OFF_W2 + HIDDEN        # 224
WL_ROWS = max(HIDDEN, INTER)      # 64

# per-layer f32 vector slab rows: (LAYERS, LV_ROWS, VOCAB_PAD)
ROW_BQKV, ROW_BO, ROW_B1, ROW_B2, ROW_LN1G, ROW_LN1B, ROW_LN2G, ROW_LN2B = range(8)
LV_ROWS = 8

# global f32 vector slab rows: (GV_ROWS, VOCAB_PAD)
GROW_EG, GROW_EB, GROW_BC = range(3)
GV_ROWS = 3


# ---------------------------------------------------------------------------
# In-kernel helpers.
# ---------------------------------------------------------------------------
def _layernorm(x, g, b):
    mu = jnp.mean(x, axis=-1, keepdims=True)
    var = jnp.mean(jnp.square(x - mu), axis=-1, keepdims=True)
    return (x - mu) * lax.rsqrt(var + 1e-12) * g + b


def _split_heads(x2d, tb, s):
    """(TB*S, HIDDEN) bf16 -> (HEADS*TB, S, HEAD_DIM), batch index = h*TB + t."""
    parts = [x2d[:, h * HEAD_DIM:(h + 1) * HEAD_DIM] for h in range(HEADS)]
    xh = jnp.stack(parts, axis=0)                       # (HEADS, TB*S, D)
    return xh.reshape(HEADS * tb, s, HEAD_DIM)          # major-dim reshape only


def _encoder_logits(ids_ref, wl_ref, emb_ref, wc_ref, lvec_ref, gvec_ref,
                    mask_bias, tb, s):
    """One batch tile: token ids -> (TB*S, VOCAB_PAD) f32 logits."""
    r = tb * s
    scale = 1.0 / float(HEAD_DIM) ** 0.5

    # ---- fused embedding lookup: exact one-hot selects on the MXU ----------
    ids = ids_ref[...]                                               # (R,1) i32
    pos = lax.broadcasted_iota(jnp.int32, (r, 1), 0) % s             # (R,1)
    vsel = (lax.broadcasted_iota(jnp.int32, (r, EMB_ROWS), 1) == ids
            ).astype(jnp.bfloat16)
    psel = (lax.broadcasted_iota(jnp.int32, (r, MAX_POS), 1) == pos
            ).astype(jnp.bfloat16)
    emb = jnp.dot(vsel, emb_ref[0:EMB_ROWS, :],
                  preferred_element_type=jnp.float32)
    emb = emb + jnp.dot(psel, emb_ref[EMB_ROWS:EMB_ROWS + MAX_POS, :],
                        preferred_element_type=jnp.float32)

    gv = gvec_ref[...]                                               # (3,128) f32
    h32 = _layernorm(emb, gv[GROW_EG:GROW_EG + 1, :HIDDEN],
                     gv[GROW_EB:GROW_EB + 1, :HIDDEN])               # f32
    hb = h32.astype(jnp.bfloat16)                                    # GEMM operand

    for l in range(LAYERS):                                          # static unroll
        lv = lvec_ref[l]                                             # (8,128) f32
        wqkv = wl_ref[l, 0:HIDDEN, OFF_WQKV:OFF_WQKV + 3 * HIDDEN]
        wo = wl_ref[l, 0:HIDDEN, OFF_WO:OFF_WO + HIDDEN]
        w1 = wl_ref[l, 0:HIDDEN, OFF_W1:OFF_W1 + INTER]
        w2 = wl_ref[l, 0:INTER, OFF_W2:OFF_W2 + HIDDEN]

        # ---- fused QKV projection (bf16 MXU, f32 acc) -----------------------
        qkv = jnp.dot(hb, wqkv, preferred_element_type=jnp.float32)
        qkv = (qkv + lv[ROW_BQKV:ROW_BQKV + 1, :3 * HIDDEN]).astype(jnp.bfloat16)

        # ---- head-batched attention -----------------------------------------
        q = _split_heads(qkv[:, 0:HIDDEN], tb, s)
        k = _split_heads(qkv[:, HIDDEN:2 * HIDDEN], tb, s)
        v = _split_heads(qkv[:, 2 * HIDDEN:3 * HIDDEN], tb, s)
        sc = jnp.einsum('bqd,bkd->bqk', q, k,
                        preferred_element_type=jnp.float32) * scale  # (H*TB,S,S)
        if mask_bias is not None:
            sc = sc + mask_bias                                      # (H*TB,1,S)
        m = jnp.max(sc, axis=-1, keepdims=True)
        e = jnp.exp(sc - m)
        p = e * pl.reciprocal(jnp.sum(e, axis=-1, keepdims=True), approx=True)
        ctx = jnp.einsum('bqk,bkd->bqd', p.astype(jnp.bfloat16), v,
                         preferred_element_type=jnp.float32)         # (H*TB,S,D)

        # fold the head concat into the output projection: sum_h ctx_h @ wo_h
        ctx = ctx.reshape(HEADS, r, HEAD_DIM).astype(jnp.bfloat16)
        wo3 = wo.reshape(HEADS, HEAD_DIM, HIDDEN)
        attn = jnp.einsum('hqd,hdo->hqo', ctx, wo3,
                          preferred_element_type=jnp.float32).sum(axis=0)
        attn = attn + lv[ROW_BO:ROW_BO + 1, :HIDDEN]
        h32 = _layernorm(h32 + attn, lv[ROW_LN1G:ROW_LN1G + 1, :HIDDEN],
                         lv[ROW_LN1B:ROW_LN1B + 1, :HIDDEN])
        hb = h32.astype(jnp.bfloat16)

        # ---- FFN (GELU tanh approx) + residual + LayerNorm -------------------
        f = jnp.dot(hb, w1, preferred_element_type=jnp.float32)
        f = f + lv[ROW_B1:ROW_B1 + 1, :INTER]
        c = 0.7978845608028654  # sqrt(2/pi)
        f = 0.5 * f * (1.0 + jnp.tanh(c * (f + 0.044715 * f * f * f)))
        f = jnp.dot(f.astype(jnp.bfloat16), w2, preferred_element_type=jnp.float32)
        f = f + lv[ROW_B2:ROW_B2 + 1, :HIDDEN]
        h32 = _layernorm(h32 + f, lv[ROW_LN2G:ROW_LN2G + 1, :HIDDEN],
                         lv[ROW_LN2B:ROW_LN2B + 1, :HIDDEN])
        hb = h32.astype(jnp.bfloat16)

    # ---- classifier: lane-dense padded vocab (pad lanes biased to -1e9) -----
    logits = jnp.dot(hb, wc_ref[...], preferred_element_type=jnp.float32)
    return logits + gv[GROW_BC:GROW_BC + 1, :]                       # (R, 128) f32


# ---------------------------------------------------------------------------
# Fused kernels (one pallas_call per forward branch).
# ---------------------------------------------------------------------------
def _probs_kernel(ids_ref, wl_ref, emb_ref, wc_ref, lvec_ref, gvec_ref, out_ref,
                  *, tb, s):
    logits = _encoder_logits(ids_ref, wl_ref, emb_ref, wc_ref, lvec_ref, gvec_ref,
                             None, tb, s)
    m = jnp.max(logits, axis=-1, keepdims=True)
    e = jnp.exp(logits - m)
    # Exact divide for the returned probabilities (matches torch.softmax).
    out_ref[...] = (e / jnp.sum(e, axis=-1, keepdims=True)).astype(out_ref.dtype)


def _loss_kernel(*refs, tb, s, use_mask):
    if use_mask:
        (ids_ref, labels_ref, wl_ref, emb_ref, wc_ref, lvec_ref, gvec_ref,
         maskb_ref, out_ref) = refs
        mask_bias = jnp.tile(maskb_ref[...], (HEADS, 1, 1))          # (H*TB,1,S)
    else:
        (ids_ref, labels_ref, wl_ref, emb_ref, wc_ref, lvec_ref, gvec_ref,
         out_ref) = refs
        mask_bias = None

    logits = _encoder_logits(ids_ref, wl_ref, emb_ref, wc_ref, lvec_ref, gvec_ref,
                             mask_bias, tb, s)                       # (R,128) f32
    labels = labels_ref[...]                                         # (R,1) i32

    # Note: labels are assumed in [0, VOCAB) or == -100 (torch semantics).
    m = jnp.max(logits, axis=-1, keepdims=True)
    lse = jnp.log(jnp.sum(jnp.exp(logits - m), axis=-1, keepdims=True)) + m
    col = lax.broadcasted_iota(jnp.int32, logits.shape, 1)
    picked = jnp.sum(jnp.where(col == labels, logits, 0.0), axis=-1, keepdims=True)
    valid = (labels != IGNORE).astype(jnp.float32)

    loss_sum = jnp.sum((lse - picked) * valid, axis=0, keepdims=True)    # (1,1)
    count = jnp.sum(valid, axis=0, keepdims=True)                        # (1,1)

    lane = lax.broadcasted_iota(jnp.int32, (1, VOCAB_PAD), 1)
    out_ref[...] = jnp.where(lane == 0, loss_sum,
                             jnp.where(lane == 1, count, 0.0))


# ---------------------------------------------------------------------------
# BlockSpec helpers.
# ---------------------------------------------------------------------------
def _rep(shape):
    """Whole-array block, same block for every grid step (weights)."""
    zeros = (0,) * len(shape)
    return pl.BlockSpec(shape, lambda t: zeros)


def _pick_tile_batch(bsz, seq):
    """Largest divisor of bsz keeping <= ~1024 rows per grid step."""
    cap = max(1, 1024 // max(seq, 1))
    tb = 1
    for cand in range(1, bsz + 1):
        if bsz % cand == 0 and cand <= cap:
            tb = cand
    return tb


# ---------------------------------------------------------------------------
# Deterministic synthetic parameters (replaces BertModel.from_pretrained).
# ---------------------------------------------------------------------------
def init_params(key):
    std = 0.02
    ks = iter(jax.random.split(key, 12))

    def nrm(shape):
        return std * jax.random.normal(next(ks), shape, jnp.float32)

    # Embedding table: word rows (padded to EMB_ROWS) then position rows;
    # token_type_embedding[0] is constant in this model -> folded into pos rows.
    wemb = jnp.zeros((EMB_ROWS, HIDDEN), jnp.float32).at[:VOCAB].set(
        nrm((VOCAB, HIDDEN)))
    pemb = nrm((MAX_POS, HIDDEN)) + nrm((1, HIDDEN))
    emb_tab = jnp.concatenate([wemb, pemb], axis=0).astype(jnp.bfloat16)

    # Per-layer bf16 GEMM slab [wqkv | wo | w1 | w2].
    wl = jnp.zeros((LAYERS, WL_ROWS, WL_LANES), jnp.float32)
    wl = wl.at[:, :HIDDEN, OFF_WQKV:OFF_WQKV + 3 * HIDDEN].set(
        nrm((LAYERS, HIDDEN, 3 * HIDDEN)))
    wl = wl.at[:, :HIDDEN, OFF_WO:OFF_WO + HIDDEN].set(nrm((LAYERS, HIDDEN, HIDDEN)))
    wl = wl.at[:, :HIDDEN, OFF_W1:OFF_W1 + INTER].set(nrm((LAYERS, HIDDEN, INTER)))
    wl = wl.at[:, :INTER, OFF_W2:OFF_W2 + HIDDEN].set(nrm((LAYERS, INTER, HIDDEN)))
    wl = wl.astype(jnp.bfloat16)

    # Classifier, padded to VOCAB_PAD lanes (pad lanes: 0 weight / -1e9 bias).
    wc = jnp.zeros((HIDDEN, VOCAB_PAD), jnp.float32).at[:, :VOCAB].set(
        nrm((HIDDEN, VOCAB))).astype(jnp.bfloat16)

    # Per-layer f32 vector slab (biases 0, LN gamma 1 / beta 0).
    lvec = jnp.zeros((LAYERS, LV_ROWS, VOCAB_PAD), jnp.float32)
    lvec = lvec.at[:, ROW_LN1G, :HIDDEN].set(1.0)
    lvec = lvec.at[:, ROW_LN2G, :HIDDEN].set(1.0)

    # Global f32 vector slab: embedding-LN gamma/beta + classifier bias.
    gvec = jnp.zeros((GV_ROWS, VOCAB_PAD), jnp.float32)
    gvec = gvec.at[GROW_EG, :HIDDEN].set(1.0)
    gvec = gvec.at[GROW_BC, :].set(
        jnp.full((VOCAB_PAD,), NEG, jnp.float32).at[:VOCAB].set(0.0))

    return {"emb_tab": emb_tab, "wl": wl, "wc": wc, "lvec": lvec, "gvec": gvec}


# ---------------------------------------------------------------------------
# forward(x, y=None, mask_tensor=None) mirroring LanguageModel.forward.
# ---------------------------------------------------------------------------
def forward(params, x, y=None, mask_tensor=None):
    B, S = x.shape
    assert S <= MAX_POS, "synthetic encoder supports sequences up to MAX_POS"
    TB = _pick_tile_batch(B, S)          # batch elements per grid step
    NT = B // TB
    R = TB * S

    ids = x.reshape(B * S, 1).astype(jnp.int32)

    weights = (params["wl"], params["emb_tab"], params["wc"],
               params["lvec"], params["gvec"])
    w_specs = [_rep(w.shape) for w in weights]
    cp = pltpu.CompilerParams(dimension_semantics=("parallel",))

    if y is None:
        kern = functools.partial(_probs_kernel, tb=TB, s=S)
        probs = pl.pallas_call(
            kern,
            out_shape=jax.ShapeDtypeStruct((B * S, VOCAB_PAD), jnp.float32),
            grid=(NT,),
            in_specs=[pl.BlockSpec((R, 1), lambda t: (t, 0))] + w_specs,
            out_specs=pl.BlockSpec((R, VOCAB_PAD), lambda t: (t, 0)),
            compiler_params=cp,
        )(ids, *weights)
        # torch.softmax(classify(x), -1): drop the padded vocab lanes (prob == 0).
        return probs.reshape(B, S, VOCAB_PAD)[:, :, :VOCAB]

    labels = y.reshape(B * S, 1).astype(jnp.int32)
    use_mask = mask_tensor is not None
    in_specs = [pl.BlockSpec((R, 1), lambda t: (t, 0)),
                pl.BlockSpec((R, 1), lambda t: (t, 0))] + w_specs
    args = [ids, labels, *weights]
    if use_mask:
        # attention_mask: 1 = attend, 0 = masked -> additive key bias.
        mask_bias = ((1.0 - mask_tensor.astype(jnp.float32)) * NEG).reshape(B, 1, S)
        in_specs.append(pl.BlockSpec((TB, 1, S), lambda t: (t, 0, 0)))
        args.append(mask_bias)

    kern = functools.partial(_loss_kernel, tb=TB, s=S, use_mask=use_mask)
    parts = pl.pallas_call(
        kern,
        out_shape=jax.ShapeDtypeStruct((NT, VOCAB_PAD), jnp.float32),
        grid=(NT,),
        in_specs=in_specs,
        out_specs=pl.BlockSpec((1, VOCAB_PAD), lambda t: (t, 0)),
        compiler_params=cp,
    )(*args)

    # F.cross_entropy(..., ignore_index=-100), mean over valid targets.
    total = jnp.sum(parts[:, 0])
    count = jnp.sum(parts[:, 1])
    return total / jnp.maximum(count, 1.0)


# ---------------------------------------------------------------------------
# Demo
# ---------------------------------------------------------------------------
if __name__ == "__main__":
    B, S = 2, 8

    key = jax.random.PRNGKey(0)
    pkey, xkey, ykey = jax.random.split(key, 3)

    params = init_params(pkey)
    x = jax.random.randint(xkey, (B, S), 0, VOCAB, dtype=jnp.int32)

    # Inference branch (y=None): softmax probabilities over the vocab.
    probs = forward(params, x)

    # Training branch (y provided): mean cross-entropy with ignore_index=-100,
    # with and without an attention mask (1 = attend, 0 = padding).
    y = jax.random.randint(ykey, (B, S), 0, VOCAB, dtype=jnp.int32)
    y = y.at[0, 0].set(-100)
    mask = jnp.ones((B, S), jnp.int32).at[1, 6:].set(0)
    loss_masked = forward(params, x, y, mask_tensor=mask)
    loss = forward(params, x, y)

    jax.block_until_ready((probs, loss, loss_masked))
    assert probs.shape == (B, S, VOCAB)
    assert bool(jnp.all(jnp.isfinite(probs)))
    assert bool(jnp.all(jnp.abs(jnp.sum(probs, axis=-1) - 1.0) < 1e-3))
    assert bool(jnp.isfinite(loss)) and bool(jnp.isfinite(loss_masked))
    print("KERNEL_OK")
</pallas_src>

<mosaic_0001>
module attributes {stable_mosaic.version = 11 : i64} {
  func.func @_probs_kernel(%arg0: i32, %arg1: memref<16x1xi32, #tpu.memory_space<vmem>>, %arg2: memref<2x64x224xbf16, #tpu.memory_space<vmem>>, %arg3: memref<48x32xbf16, #tpu.memory_space<vmem>>, %arg4: memref<32x128xbf16, #tpu.memory_space<vmem>>, %arg5: memref<2x8x128xf32, #tpu.memory_space<vmem>>, %arg6: memref<3x128xf32, #tpu.memory_space<vmem>>, %arg7: memref<16x128xf32, #tpu.memory_space<vmem>>) attributes {dimension_semantics = [#tpu.dimension_semantics<parallel>], iteration_bounds = array<i64: 1>, scalar_prefetch = 0 : i64, scratch_operands = 0 : i64, tpu.core_type = #tpu.core_type<tc>, window_params = [{transform_indices = @transform_0, window_bounds = array<i64: 16, 1>}, {pipeline_mode = #tpu.pipeline_mode<synchronous>, transform_indices = @transform_1, window_bounds = array<i64: 2, 64, 224>}, {pipeline_mode = #tpu.pipeline_mode<synchronous>, transform_indices = @transform_2, window_bounds = array<i64: 48, 32>}, {pipeline_mode = #tpu.pipeline_mode<synchronous>, transform_indices = @transform_3, window_bounds = array<i64: 32, 128>}, {pipeline_mode = #tpu.pipeline_mode<synchronous>, transform_indices = @transform_4, window_bounds = array<i64: 2, 8, 128>}, {pipeline_mode = #tpu.pipeline_mode<synchronous>, transform_indices = @transform_5, window_bounds = array<i64: 3, 128>}, {transform_indices = @transform_6, window_bounds = array<i64: 16, 128>}]} {
    %c0 = arith.constant 0 : index
    %c0_0 = arith.constant 0 : index
    %0 = vector.load %arg1[%c0, %c0_0] : memref<16x1xi32, #tpu.memory_space<vmem>>, vector<16x1xi32>
    %1 = tpu.iota {dimensions = array<i32: 0>} : vector<16x1xi32>
    %c8_i32 = arith.constant 8 : i32
    %c0_i32 = arith.constant 0 : i32
    %2 = arith.cmpi eq, %c8_i32, %c0_i32 : i32
    %c1_i32 = arith.constant 1 : i32
    %3 = arith.select %2, %c1_i32, %c8_i32 : i32
    %4 = vector.broadcast %3 : i32 to vector<16x1xi32>
    %5 = arith.remsi %1, %4 : vector<16x1xi32>
    %c0_i32_1 = arith.constant 0 : i32
    %6 = vector.broadcast %c0_i32_1 : i32 to vector<16x1xi32>
    %7 = arith.cmpi ne, %5, %6 : vector<16x1xi32>
    %c0_i32_2 = arith.constant 0 : i32
    %8 = vector.broadcast %c0_i32_2 : i32 to vector<16x1xi32>
    %9 = arith.cmpi slt, %5, %8 : vector<16x1xi32>
    %c0_i32_3 = arith.constant 0 : i32
    %10 = arith.cmpi slt, %3, %c0_i32_3 : i32
    %11 = vector.broadcast %10 : i1 to vector<16x1xi1>
    %12 = vector.broadcast %11 : vector<16x1xi1> to vector<16x1xi1>
    %13 = arith.xori %9, %12 : vector<16x1xi1>
    %14 = arith.andi %13, %7 : vector<16x1xi1>
    %15 = vector.broadcast %3 : i32 to vector<16x1xi32>
    %16 = arith.addi %5, %15 : vector<16x1xi32>
    %17 = arith.select %14, %16, %5 : vector<16x1xi1>, vector<16x1xi32>
    %18 = tpu.iota {dimensions = array<i32: 1>} : vector<16x32xi32>
    %19 = vector.broadcast %0 : vector<16x1xi32> to vector<16x32xi32>
    %20 = arith.cmpi eq, %18, %19 : vector<16x32xi32>
    %21 = arith.extui %20 : vector<16x32xi1> to vector<16x32xi32>
    %22 = arith.sitofp %21 : vector<16x32xi32> to vector<16x32xf32>
    %23 = arith.truncf %22 : vector<16x32xf32> to vector<16x32xbf16>
    %24 = tpu.iota {dimensions = array<i32: 1>} : vector<16x16xi32>
    %25 = vector.broadcast %17 : vector<16x1xi32> to vector<16x16xi32>
    %26 = arith.cmpi eq, %24, %25 : vector<16x16xi32>
    %27 = arith.extui %26 : vector<16x16xi1> to vector<16x16xi32>
    %28 = arith.sitofp %27 : vector<16x16xi32> to vector<16x16xf32>
    %29 = arith.truncf %28 : vector<16x16xf32> to vector<16x16xbf16>
    %c0_4 = arith.constant 0 : index
    %c0_5 = arith.constant 0 : index
    %30 = vector.load %arg3[%c0_4, %c0_5] : memref<48x32xbf16, #tpu.memory_space<vmem>>, vector<32x32xbf16>
    %cst = arith.constant dense<0.000000e+00> : vector<16x32xf32>
    %31 = tpu.matmul %23, %30, %cst {dimension_numbers = #tpu.dot_dimension_numbers<[1], [0], [0], [1], [0, 0, 1, 1], [], []>} : vector<16x32xbf16>, vector<32x32xbf16>, vector<16x32xf32> -> vector<16x32xf32>
    %c32 = arith.constant 32 : index
    %c0_6 = arith.constant 0 : index
    %32 = vector.load %arg3[%c32, %c0_6] : memref<48x32xbf16, #tpu.memory_space<vmem>>, vector<16x32xbf16>
    %cst_7 = arith.constant dense<0.000000e+00> : vector<16x32xf32>
    %33 = tpu.matmul %29, %32, %cst_7 {dimension_numbers = #tpu.dot_dimension_numbers<[1], [0], [0], [1], [0, 0, 1, 1], [], []>} : vector<16x16xbf16>, vector<16x32xbf16>, vector<16x32xf32> -> vector<16x32xf32>
    %34 = arith.addf %31, %33 : vector<16x32xf32>
    %c0_8 = arith.constant 0 : index
    %c0_9 = arith.constant 0 : index
    %35 = vector.load %arg6[%c0_8, %c0_9] : memref<3x128xf32, #tpu.memory_space<vmem>>, vector<3x128xf32>
    %36 = vector.extract_strided_slice %35 {offsets = [0, 0], sizes = [1, 32], strides = [1, 1]} : vector<3x128xf32> to vector<1x32xf32>
    %37 = vector.extract_strided_slice %35 {offsets = [1, 0], sizes = [1, 32], strides = [1, 1]} : vector<3x128xf32> to vector<1x32xf32>
    %cst_10 = arith.constant dense<0.000000e+00> : vector<16xf32>
    %38 = vector.multi_reduction <add>, %34, %cst_10 [1] : vector<16x32xf32> to vector<16xf32>
    %39 = vector.shape_cast %38 : vector<16xf32> to vector<16x1xf32>
    %cst_11 = arith.constant 3.200000e+01 : f32
    %40 = vector.broadcast %cst_11 : f32 to vector<16x1xf32>
    %41 = arith.divf %39, %40 : vector<16x1xf32>
    %42 = vector.broadcast %41 : vector<16x1xf32> to vector<16x32xf32>
    %43 = arith.subf %34, %42 : vector<16x32xf32>
    %44 = arith.mulf %43, %43 : vector<16x32xf32>
    %cst_12 = arith.constant dense<0.000000e+00> : vector<16xf32>
    %45 = vector.multi_reduction <add>, %44, %cst_12 [1] : vector<16x32xf32> to vector<16xf32>
    %46 = vector.shape_cast %45 : vector<16xf32> to vector<16x1xf32>
    %cst_13 = arith.constant 3.200000e+01 : f32
    %47 = vector.broadcast %cst_13 : f32 to vector<16x1xf32>
    %48 = arith.divf %46, %47 : vector<16x1xf32>
    %49 = vector.broadcast %41 : vector<16x1xf32> to vector<16x32xf32>
    %50 = arith.subf %34, %49 : vector<16x32xf32>
    %cst_14 = arith.constant 9.99999996E-13 : f32
    %51 = vector.broadcast %cst_14 : f32 to vector<16x1xf32>
    %52 = arith.addf %48, %51 : vector<16x1xf32>
    %53 = math.rsqrt %52 : vector<16x1xf32>
    %54 = vector.broadcast %53 : vector<16x1xf32> to vector<16x32xf32>
    %55 = arith.mulf %50, %54 : vector<16x32xf32>
    %56 = vector.broadcast %36 : vector<1x32xf32> to vector<16x32xf32>
    %57 = arith.mulf %55, %56 : vector<16x32xf32>
    %58 = vector.broadcast %37 : vector<1x32xf32> to vector<16x32xf32>
    %59 = arith.addf %57, %58 : vector<16x32xf32>
    %60 = arith.truncf %59 : vector<16x32xf32> to vector<16x32xbf16>
    %c0_15 = arith.constant 0 : index
    %c0_16 = arith.constant 0 : index
    %c0_17 = arith.constant 0 : index
    %61 = vector.load %arg5[%c0_15, %c0_16, %c0_17] : memref<2x8x128xf32, #tpu.memory_space<vmem>>, vector<1x8x128xf32>
    %62 = vector.shape_cast %61 : vector<1x8x128xf32> to vector<8x128xf32>
    %c0_18 = arith.constant 0 : index
    %c0_19 = arith.constant 0 : index
    %c0_20 = arith.constant 0 : index
    %63 = vector.load %arg2[%c0_18, %c0_19, %c0_20] : memref<2x64x224xbf16, #tpu.memory_space<vmem>>, vector<1x32x96xbf16>
    %64 = vector.shape_cast %63 : vector<1x32x96xbf16> to vector<32x96xbf16>
    %c0_21 = arith.constant 0 : index
    %c0_22 = arith.constant 0 : index
    %c96 = arith.constant 96 : index
    %65 = vector.load %arg2[%c0_21, %c0_22, %c96] : memref<2x64x224xbf16, #tpu.memory_space<vmem>>, vector<1x32x32xbf16>
    %66 = vector.shape_cast %65 : vector<1x32x32xbf16> to vector<32x32xbf16>
    %c0_23 = arith.constant 0 : index
    %c0_24 = arith.constant 0 : index
    %c128 = arith.constant 128 : index
    %67 = vector.load %arg2[%c0_23, %c0_24, %c128] : memref<2x64x224xbf16, #tpu.memory_space<vmem>>, vector<1x32x64xbf16>
    %68 = vector.shape_cast %67 : vector<1x32x64xbf16> to vector<32x64xbf16>
    %c0_25 = arith.constant 0 : index
    %c0_26 = arith.constant 0 : index
    %c192 = arith.constant 192 : index
    %69 = vector.load %arg2[%c0_25, %c0_26, %c192] : memref<2x64x224xbf16, #tpu.memory_space<vmem>>, vector<1x64x32xbf16>
    %70 = vector.shape_cast %69 : vector<1x64x32xbf16> to vector<64x32xbf16>
    %cst_27 = arith.constant dense<0.000000e+00> : vector<16x96xf32>
    %71 = tpu.matmul %60, %64, %cst_27 {dimension_numbers = #tpu.dot_dimension_numbers<[1], [0], [0], [1], [0, 0, 1, 1], [], []>} : vector<16x32xbf16>, vector<32x96xbf16>, vector<16x96xf32> -> vector<16x96xf32>
    %72 = vector.extract_strided_slice %62 {offsets = [0, 0], sizes = [1, 96], strides = [1, 1]} : vector<8x128xf32> to vector<1x96xf32>
    %73 = vector.broadcast %72 : vector<1x96xf32> to vector<16x96xf32>
    %74 = arith.addf %71, %73 : vector<16x96xf32>
    %75 = arith.truncf %74 : vector<16x96xf32> to vector<16x96xbf16>
    %76 = vector.extract_strided_slice %75 {offsets = [0, 0], sizes = [16, 32], strides = [1, 1]} : vector<16x96xbf16> to vector<16x32xbf16>
    %77 = vector.extract_strided_slice %76 {offsets = [0, 0], sizes = [16, 8], strides = [1, 1]} : vector<16x32xbf16> to vector<16x8xbf16>
    %78 = vector.extract_strided_slice %76 {offsets = [0, 8], sizes = [16, 8], strides = [1, 1]} : vector<16x32xbf16> to vector<16x8xbf16>
    %79 = vector.extract_strided_slice %76 {offsets = [0, 16], sizes = [16, 8], strides = [1, 1]} : vector<16x32xbf16> to vector<16x8xbf16>
    %80 = vector.extract_strided_slice %76 {offsets = [0, 24], sizes = [16, 8], strides = [1, 1]} : vector<16x32xbf16> to vector<16x8xbf16>
    %81 = vector.shape_cast %77 : vector<16x8xbf16> to vector<1x16x8xbf16>
    %82 = vector.shape_cast %78 : vector<16x8xbf16> to vector<1x16x8xbf16>
    %83 = vector.shape_cast %79 : vector<16x8xbf16> to vector<1x16x8xbf16>
    %84 = vector.shape_cast %80 : vector<16x8xbf16> to vector<1x16x8xbf16>
    %85 = tpu.concatenate %81, %82, %83, %84 in 0 : vector<1x16x8xbf16>, vector<1x16x8xbf16>, vector<1x16x8xbf16>, vector<1x16x8xbf16> -> vector<4x16x8xbf16>
    %86 = vector.shape_cast %85 : vector<4x16x8xbf16> to vector<8x8x8xbf16>
    %87 = vector.extract_strided_slice %75 {offsets = [0, 32], sizes = [16, 32], strides = [1, 1]} : vector<16x96xbf16> to vector<16x32xbf16>
    %88 = vector.extract_strided_slice %87 {offsets = [0, 0], sizes = [16, 8], strides = [1, 1]} : vector<16x32xbf16> to vector<16x8xbf16>
    %89 = vector.extract_strided_slice %87 {offsets = [0, 8], sizes = [16, 8], strides = [1, 1]} : vector<16x32xbf16> to vector<16x8xbf16>
    %90 = vector.extract_strided_slice %87 {offsets = [0, 16], sizes = [16, 8], strides = [1, 1]} : vector<16x32xbf16> to vector<16x8xbf16>
    %91 = vector.extract_strided_slice %87 {offsets = [0, 24], sizes = [16, 8], strides = [1, 1]} : vector<16x32xbf16> to vector<16x8xbf16>
    %92 = vector.shape_cast %88 : vector<16x8xbf16> to vector<1x16x8xbf16>
    %93 = vector.shape_cast %89 : vector<16x8xbf16> to vector<1x16x8xbf16>
    %94 = vector.shape_cast %90 : vector<16x8xbf16> to vector<1x16x8xbf16>
    %95 = vector.shape_cast %91 : vector<16x8xbf16> to vector<1x16x8xbf16>
    %96 = tpu.concatenate %92, %93, %94, %95 in 0 : vector<1x16x8xbf16>, vector<1x16x8xbf16>, vector<1x16x8xbf16>, vector<1x16x8xbf16> -> vector<4x16x8xbf16>
    %97 = vector.shape_cast %96 : vector<4x16x8xbf16> to vector<8x8x8xbf16>
    %98 = vector.extract_strided_slice %75 {offsets = [0, 64], sizes = [16, 32], strides = [1, 1]} : vector<16x96xbf16> to vector<16x32xbf16>
    %99 = vector.extract_strided_slice %98 {offsets = [0, 0], sizes = [16, 8], strides = [1, 1]} : vector<16x32xbf16> to vector<16x8xbf16>
    %100 = vector.extract_strided_slice %98 {offsets = [0, 8], sizes = [16, 8], strides = [1, 1]} : vector<16x32xbf16> to vector<16x8xbf16>
    %101 = vector.extract_strided_slice %98 {offsets = [0, 16], sizes = [16, 8], strides = [1, 1]} : vector<16x32xbf16> to vector<16x8xbf16>
    %102 = vector.extract_strided_slice %98 {offsets = [0, 24], sizes = [16, 8], strides = [1, 1]} : vector<16x32xbf16> to vector<16x8xbf16>
    %103 = vector.shape_cast %99 : vector<16x8xbf16> to vector<1x16x8xbf16>
    %104 = vector.shape_cast %100 : vector<16x8xbf16> to vector<1x16x8xbf16>
    %105 = vector.shape_cast %101 : vector<16x8xbf16> to vector<1x16x8xbf16>
    %106 = vector.shape_cast %102 : vector<16x8xbf16> to vector<1x16x8xbf16>
    %107 = tpu.concatenate %103, %104, %105, %106 in 0 : vector<1x16x8xbf16>, vector<1x16x8xbf16>, vector<1x16x8xbf16>, vector<1x16x8xbf16> -> vector<4x16x8xbf16>
    %108 = vector.shape_cast %107 : vector<4x16x8xbf16> to vector<8x8x8xbf16>
    "tpu.trace_start"() <{level = 10 : i32, message = "bqd,bkd->bqk"}> : () -> ()
    %cst_28 = arith.constant dense<0.000000e+00> : vector<8x8x8xf32>
    %109 = tpu.matmul %86, %97, %cst_28 {dimension_numbers = #tpu.dot_dimension_numbers<[2], [2], [1], [1], [0, 0, 0, 1, 1, 1], [0], [0]>} : vector<8x8x8xbf16>, vector<8x8x8xbf16>, vector<8x8x8xf32> -> vector<8x8x8xf32>
    "tpu.trace_stop"() : () -> ()
    %cst_29 = arith.constant 0.353553385 : f32
    %110 = vector.broadcast %cst_29 : f32 to vector<8x8x8xf32>
    %111 = arith.mulf %109, %110 : vector<8x8x8xf32>
    %cst_30 = arith.constant dense<0xFF800000> : vector<8x8xf32>
    %112 = vector.multi_reduction <maximumf>, %111, %cst_30 [2] : vector<8x8x8xf32> to vector<8x8xf32>
    %113 = vector.shape_cast %112 : vector<8x8xf32> to vector<8x8x1xf32>
    %114 = vector.broadcast %113 : vector<8x8x1xf32> to vector<8x8x8xf32>
    %115 = arith.subf %111, %114 : vector<8x8x8xf32>
    %116 = math.exp %115 : vector<8x8x8xf32>
    %cst_31 = arith.constant dense<0.000000e+00> : vector<8x8xf32>
    %117 = vector.multi_reduction <add>, %116, %cst_31 [2] : vector<8x8x8xf32> to vector<8x8xf32>
    %118 = vector.shape_cast %117 : vector<8x8xf32> to vector<8x8x1xf32>
    %119 = tpu.reciprocal %118 {approx = true} : vector<8x8x1xf32> -> vector<8x8x1xf32>
    %120 = vector.broadcast %119 : vector<8x8x1xf32> to vector<8x8x8xf32>
    %121 = arith.mulf %116, %120 : vector<8x8x8xf32>
    %122 = arith.truncf %121 : vector<8x8x8xf32> to vector<8x8x8xbf16>
    "tpu.trace_start"() <{level = 10 : i32, message = "bqk,bkd->bqd"}> : () -> ()
    %cst_32 = arith.constant dense<0.000000e+00> : vector<8x8x8xf32>
    %123 = tpu.matmul %122, %108, %cst_32 {dimension_numbers = #tpu.dot_dimension_numbers<[2], [1], [1], [2], [0, 0, 0, 1, 1, 2], [0], [0]>} : vector<8x8x8xbf16>, vector<8x8x8xbf16>, vector<8x8x8xf32> -> vector<8x8x8xf32>
    "tpu.trace_stop"() : () -> ()
    %124 = vector.shape_cast %123 : vector<8x8x8xf32> to vector<4x16x8xf32>
    %125 = arith.truncf %124 : vector<4x16x8xf32> to vector<4x16x8xbf16>
    %126 = vector.shape_cast %66 : vector<32x32xbf16> to vector<4x8x32xbf16>
    "tpu.trace_start"() <{level = 10 : i32, message = "hqd,hdo->hqo"}> : () -> ()
    %cst_33 = arith.constant dense<0.000000e+00> : vector<4x16x32xf32>
    %127 = tpu.matmul %125, %126, %cst_33 {dimension_numbers = #tpu.dot_dimension_numbers<[2], [1], [1], [2], [0, 0, 0, 1, 1, 2], [0], [0]>} : vector<4x16x8xbf16>, vector<4x8x32xbf16>, vector<4x16x32xf32> -> vector<4x16x32xf32>
    "tpu.trace_stop"() : () -> ()
    %cst_34 = arith.constant dense<0.000000e+00> : vector<16x32xf32>
    %128 = vector.multi_reduction <add>, %127, %cst_34 [0] : vector<4x16x32xf32> to vector<16x32xf32>
    %129 = vector.extract_strided_slice %62 {offsets = [1, 0], sizes = [1, 32], strides = [1, 1]} : vector<8x128xf32> to vector<1x32xf32>
    %130 = vector.broadcast %129 : vector<1x32xf32> to vector<16x32xf32>
    %131 = arith.addf %128, %130 : vector<16x32xf32>
    %132 = arith.addf %59, %131 : vector<16x32xf32>
    %133 = vector.extract_strided_slice %62 {offsets = [4, 0], sizes = [1, 32], strides = [1, 1]} : vector<8x128xf32> to vector<1x32xf32>
    %134 = vector.extract_strided_slice %62 {offsets = [5, 0], sizes = [1, 32], strides = [1, 1]} : vector<8x128xf32> to vector<1x32xf32>
    %cst_35 = arith.constant dense<0.000000e+00> : vector<16xf32>
    %135 = vector.multi_reduction <add>, %132, %cst_35 [1] : vector<16x32xf32> to vector<16xf32>
    %136 = vector.shape_cast %135 : vector<16xf32> to vector<16x1xf32>
    %cst_36 = arith.constant 3.200000e+01 : f32
    %137 = vector.broadcast %cst_36 : f32 to vector<16x1xf32>
    %138 = arith.divf %136, %137 : vector<16x1xf32>
    %139 = vector.broadcast %138 : vector<16x1xf32> to vector<16x32xf32>
    %140 = arith.subf %132, %139 : vector<16x32xf32>
    %141 = arith.mulf %140, %140 : vector<16x32xf32>
    %cst_37 = arith.constant dense<0.000000e+00> : vector<16xf32>
    %142 = vector.multi_reduction <add>, %141, %cst_37 [1] : vector<16x32xf32> to vector<16xf32>
    %143 = vector.shape_cast %142 : vector<16xf32> to vector<16x1xf32>
    %cst_38 = arith.constant 3.200000e+01 : f32
    %144 = vector.broadcast %cst_38 : f32 to vector<16x1xf32>
    %145 = arith.divf %143, %144 : vector<16x1xf32>
    %146 = vector.broadcast %138 : vector<16x1xf32> to vector<16x32xf32>
    %147 = arith.subf %132, %146 : vector<16x32xf32>
    %cst_39 = arith.constant 9.99999996E-13 : f32
    %148 = vector.broadcast %cst_39 : f32 to vector<16x1xf32>
    %149 = arith.addf %145, %148 : vector<16x1xf32>
    %150 = math.rsqrt %149 : vector<16x1xf32>
    %151 = vector.broadcast %150 : vector<16x1xf32> to vector<16x32xf32>
    %152 = arith.mulf %147, %151 : vector<16x32xf32>
    %153 = vector.broadcast %133 : vector<1x32xf32> to vector<16x32xf32>
    %154 = arith.mulf %152, %153 : vector<16x32xf32>
    %155 = vector.broadcast %134 : vector<1x32xf32> to vector<16x32xf32>
    %156 = arith.addf %154, %155 : vector<16x32xf32>
    %157 = arith.truncf %156 : vector<16x32xf32> to vector<16x32xbf16>
    %cst_40 = arith.constant dense<0.000000e+00> : vector<16x64xf32>
    %158 = tpu.matmul %157, %68, %cst_40 {dimension_numbers = #tpu.dot_dimension_numbers<[1], [0], [0], [1], [0, 0, 1, 1], [], []>} : vector<16x32xbf16>, vector<32x64xbf16>, vector<16x64xf32> -> vector<16x64xf32>
    %159 = vector.extract_strided_slice %62 {offsets = [2, 0], sizes = [1, 64], strides = [1, 1]} : vector<8x128xf32> to vector<1x64xf32>
    %160 = vector.broadcast %159 : vector<1x64xf32> to vector<16x64xf32>
    %161 = arith.addf %158, %160 : vector<16x64xf32>
    %cst_41 = arith.constant 5.000000e-01 : f32
    %162 = vector.broadcast %cst_41 : f32 to vector<16x64xf32>
    %163 = arith.mulf %162, %161 : vector<16x64xf32>
    %cst_42 = arith.constant 4.471500e-02 : f32
    %164 = vector.broadcast %cst_42 : f32 to vector<16x64xf32>
    %165 = arith.mulf %164, %161 : vector<16x64xf32>
    %166 = arith.mulf %165, %161 : vector<16x64xf32>
    %167 = arith.mulf %166, %161 : vector<16x64xf32>
    %168 = arith.addf %161, %167 : vector<16x64xf32>
    %cst_43 = arith.constant 0.797884583 : f32
    %169 = vector.broadcast %cst_43 : f32 to vector<16x64xf32>
    %170 = arith.mulf %169, %168 : vector<16x64xf32>
    %171 = math.tanh %170 : vector<16x64xf32>
    %cst_44 = arith.constant 1.000000e+00 : f32
    %172 = vector.broadcast %cst_44 : f32 to vector<16x64xf32>
    %173 = arith.addf %172, %171 : vector<16x64xf32>
    %174 = arith.mulf %163, %173 : vector<16x64xf32>
    %175 = arith.truncf %174 : vector<16x64xf32> to vector<16x64xbf16>
    %cst_45 = arith.constant dense<0.000000e+00> : vector<16x32xf32>
    %176 = tpu.matmul %175, %70, %cst_45 {dimension_numbers = #tpu.dot_dimension_numbers<[1], [0], [0], [1], [0, 0, 1, 1], [], []>} : vector<16x64xbf16>, vector<64x32xbf16>, vector<16x32xf32> -> vector<16x32xf32>
    %177 = vector.extract_strided_slice %62 {offsets = [3, 0], sizes = [1, 32], strides = [1, 1]} : vector<8x128xf32> to vector<1x32xf32>
    %178 = vector.broadcast %177 : vector<1x32xf32> to vector<16x32xf32>
    %179 = arith.addf %176, %178 : vector<16x32xf32>
    %180 = arith.addf %156, %179 : vector<16x32xf32>
    %181 = vector.extract_strided_slice %62 {offsets = [6, 0], sizes = [1, 32], strides = [1, 1]} : vector<8x128xf32> to vector<1x32xf32>
    %182 = vector.extract_strided_slice %62 {offsets = [7, 0], sizes = [1, 32], strides = [1, 1]} : vector<8x128xf32> to vector<1x32xf32>
    %cst_46 = arith.constant dense<0.000000e+00> : vector<16xf32>
    %183 = vector.multi_reduction <add>, %180, %cst_46 [1] : vector<16x32xf32> to vector<16xf32>
    %184 = vector.shape_cast %183 : vector<16xf32> to vector<16x1xf32>
    %cst_47 = arith.constant 3.200000e+01 : f32
    %185 = vector.broadcast %cst_47 : f32 to vector<16x1xf32>
    %186 = arith.divf %184, %185 : vector<16x1xf32>
    %187 = vector.broadcast %186 : vector<16x1xf32> to vector<16x32xf32>
    %188 = arith.subf %180, %187 : vector<16x32xf32>
    %189 = arith.mulf %188, %188 : vector<16x32xf32>
    %cst_48 = arith.constant dense<0.000000e+00> : vector<16xf32>
    %190 = vector.multi_reduction <add>, %189, %cst_48 [1] : vector<16x32xf32> to vector<16xf32>
    %191 = vector.shape_cast %190 : vector<16xf32> to vector<16x1xf32>
    %cst_49 = arith.constant 3.200000e+01 : f32
    %192 = vector.broadcast %cst_49 : f32 to vector<16x1xf32>
    %193 = arith.divf %191, %192 : vector<16x1xf32>
    %194 = vector.broadcast %186 : vector<16x1xf32> to vector<16x32xf32>
    %195 = arith.subf %180, %194 : vector<16x32xf32>
    %cst_50 = arith.constant 9.99999996E-13 : f32
    %196 = vector.broadcast %cst_50 : f32 to vector<16x1xf32>
    %197 = arith.addf %193, %196 : vector<16x1xf32>
    %198 = math.rsqrt %197 : vector<16x1xf32>
    %199 = vector.broadcast %198 : vector<16x1xf32> to vector<16x32xf32>
    %200 = arith.mulf %195, %199 : vector<16x32xf32>
    %201 = vector.broadcast %181 : vector<1x32xf32> to vector<16x32xf32>
    %202 = arith.mulf %200, %201 : vector<16x32xf32>
    %203 = vector.broadcast %182 : vector<1x32xf32> to vector<16x32xf32>
    %204 = arith.addf %202, %203 : vector<16x32xf32>
    %205 = arith.truncf %204 : vector<16x32xf32> to vector<16x32xbf16>
    %c1 = arith.constant 1 : index
    %c0_51 = arith.constant 0 : index
    %c0_52 = arith.constant 0 : index
    %206 = vector.load %arg5[%c1, %c0_51, %c0_52] : memref<2x8x128xf32, #tpu.memory_space<vmem>>, vector<1x8x128xf32>
    %207 = vector.shape_cast %206 : vector<1x8x128xf32> to vector<8x128xf32>
    %c1_53 = arith.constant 1 : index
    %c0_54 = arith.constant 0 : index
    %c0_55 = arith.constant 0 : index
    %208 = vector.load %arg2[%c1_53, %c0_54, %c0_55] : memref<2x64x224xbf16, #tpu.memory_space<vmem>>, vector<1x32x96xbf16>
    %209 = vector.shape_cast %208 : vector<1x32x96xbf16> to vector<32x96xbf16>
    %c1_56 = arith.constant 1 : index
    %c0_57 = arith.constant 0 : index
    %c96_58 = arith.constant 96 : index
    %210 = vector.load %arg2[%c1_56, %c0_57, %c96_58] : memref<2x64x224xbf16, #tpu.memory_space<vmem>>, vector<1x32x32xbf16>
    %211 = vector.shape_cast %210 : vector<1x32x32xbf16> to vector<32x32xbf16>
    %c1_59 = arith.constant 1 : index
    %c0_60 = arith.constant 0 : index
    %c128_61 = arith.constant 128 : index
    %212 = vector.load %arg2[%c1_59, %c0_60, %c128_61] : memref<2x64x224xbf16, #tpu.memory_space<vmem>>, vector<1x32x64xbf16>
    %213 = vector.shape_cast %212 : vector<1x32x64xbf16> to vector<32x64xbf16>
    %c1_62 = arith.constant 1 : index
    %c0_63 = arith.constant 0 : index
    %c192_64 = arith.constant 192 : index
    %214 = vector.load %arg2[%c1_62, %c0_63, %c192_64] : memref<2x64x224xbf16, #tpu.memory_space<vmem>>, vector<1x64x32xbf16>
    %215 = vector.shape_cast %214 : vector<1x64x32xbf16> to vector<64x32xbf16>
    %cst_65 = arith.constant dense<0.000000e+00> : vector<16x96xf32>
    %216 = tpu.matmul %205, %209, %cst_65 {dimension_numbers = #tpu.dot_dimension_numbers<[1], [0], [0], [1], [0, 0, 1, 1], [], []>} : vector<16x32xbf16>, vector<32x96xbf16>, vector<16x96xf32> -> vector<16x96xf32>
    %217 = vector.extract_strided_slice %207 {offsets = [0, 0], sizes = [1, 96], strides = [1, 1]} : vector<8x128xf32> to vector<1x96xf32>
    %218 = vector.broadcast %217 : vector<1x96xf32> to vector<16x96xf32>
    %219 = arith.addf %216, %218 : vector<16x96xf32>
    %220 = arith.truncf %219 : vector<16x96xf32> to vector<16x96xbf16>
    %221 = vector.extract_strided_slice %220 {offsets = [0, 0], sizes = [16, 32], strides = [1, 1]} : vector<16x96xbf16> to vector<16x32xbf16>
    %222 = vector.extract_strided_slice %221 {offsets = [0, 0], sizes = [16, 8], strides = [1, 1]} : vector<16x32xbf16> to vector<16x8xbf16>
    %223 = vector.extract_strided_slice %221 {offsets = [0, 8], sizes = [16, 8], strides = [1, 1]} : vector<16x32xbf16> to vector<16x8xbf16>
    %224 = vector.extract_strided_slice %221 {offsets = [0, 16], sizes = [16, 8], strides = [1, 1]} : vector<16x32xbf16> to vector<16x8xbf16>
    %225 = vector.extract_strided_slice %221 {offsets = [0, 24], sizes = [16, 8], strides = [1, 1]} : vector<16x32xbf16> to vector<16x8xbf16>
    %226 = vector.shape_cast %222 : vector<16x8xbf16> to vector<1x16x8xbf16>
    %227 = vector.shape_cast %223 : vector<16x8xbf16> to vector<1x16x8xbf16>
    %228 = vector.shape_cast %224 : vector<16x8xbf16> to vector<1x16x8xbf16>
    %229 = vector.shape_cast %225 : vector<16x8xbf16> to vector<1x16x8xbf16>
    %230 = tpu.concatenate %226, %227, %228, %229 in 0 : vector<1x16x8xbf16>, vector<1x16x8xbf16>, vector<1x16x8xbf16>, vector<1x16x8xbf16> -> vector<4x16x8xbf16>
    %231 = vector.shape_cast %230 : vector<4x16x8xbf16> to vector<8x8x8xbf16>
    %232 = vector.extract_strided_slice %220 {offsets = [0, 32], sizes = [16, 32], strides = [1, 1]} : vector<16x96xbf16> to vector<16x32xbf16>
    %233 = vector.extract_strided_slice %232 {offsets = [0, 0], sizes = [16, 8], strides = [1, 1]} : vector<16x32xbf16> to vector<16x8xbf16>
    %234 = vector.extract_strided_slice %232 {offsets = [0, 8], sizes = [16, 8], strides = [1, 1]} : vector<16x32xbf16> to vector<16x8xbf16>
    %235 = vector.extract_strided_slice %232 {offsets = [0, 16], sizes = [16, 8], strides = [1, 1]} : vector<16x32xbf16> to vector<16x8xbf16>
    %236 = vector.extract_strided_slice %232 {offsets = [0, 24], sizes = [16, 8], strides = [1, 1]} : vector<16x32xbf16> to vector<16x8xbf16>
    %237 = vector.shape_cast %233 : vector<16x8xbf16> to vector<1x16x8xbf16>
    %238 = vector.shape_cast %234 : vector<16x8xbf16> to vector<1x16x8xbf16>
    %239 = vector.shape_cast %235 : vector<16x8xbf16> to vector<1x16x8xbf16>
    %240 = vector.shape_cast %236 : vector<16x8xbf16> to vector<1x16x8xbf16>
    %241 = tpu.concatenate %237, %238, %239, %240 in 0 : vector<1x16x8xbf16>, vector<1x16x8xbf16>, vector<1x16x8xbf16>, vector<1x16x8xbf16> -> vector<4x16x8xbf16>
    %242 = vector.shape_cast %241 : vector<4x16x8xbf16> to vector<8x8x8xbf16>
    %243 = vector.extract_strided_slice %220 {offsets = [0, 64], sizes = [16, 32], strides = [1, 1]} : vector<16x96xbf16> to vector<16x32xbf16>
    %244 = vector.extract_strided_slice %243 {offsets = [0, 0], sizes = [16, 8], strides = [1, 1]} : vector<16x32xbf16> to vector<16x8xbf16>
    %245 = vector.extract_strided_slice %243 {offsets = [0, 8], sizes = [16, 8], strides = [1, 1]} : vector<16x32xbf16> to vector<16x8xbf16>
    %246 = vector.extract_strided_slice %243 {offsets = [0, 16], sizes = [16, 8], strides = [1, 1]} : vector<16x32xbf16> to vector<16x8xbf16>
    %247 = vector.extract_strided_slice %243 {offsets = [0, 24], sizes = [16, 8], strides = [1, 1]} : vector<16x32xbf16> to vector<16x8xbf16>
    %248 = vector.shape_cast %244 : vector<16x8xbf16> to vector<1x16x8xbf16>
    %249 = vector.shape_cast %245 : vector<16x8xbf16> to vector<1x16x8xbf16>
    %250 = vector.shape_cast %246 : vector<16x8xbf16> to vector<1x16x8xbf16>
    %251 = vector.shape_cast %247 : vector<16x8xbf16> to vector<1x16x8xbf16>
    %252 = tpu.concatenate %248, %249, %250, %251 in 0 : vector<1x16x8xbf16>, vector<1x16x8xbf16>, vector<1x16x8xbf16>, vector<1x16x8xbf16> -> vector<4x16x8xbf16>
    %253 = vector.shape_cast %252 : vector<4x16x8xbf16> to vector<8x8x8xbf16>
    "tpu.trace_start"() <{level = 10 : i32, message = "bqd,bkd->bqk"}> : () -> ()
    %cst_66 = arith.constant dense<0.000000e+00> : vector<8x8x8xf32>
    %254 = tpu.matmul %231, %242, %cst_66 {dimension_numbers = #tpu.dot_dimension_numbers<[2], [2], [1], [1], [0, 0, 0, 1, 1, 1], [0], [0]>} : vector<8x8x8xbf16>, vector<8x8x8xbf16>, vector<8x8x8xf32> -> vector<8x8x8xf32>
    "tpu.trace_stop"() : () -> ()
    %cst_67 = arith.constant 0.353553385 : f32
    %255 = vector.broadcast %cst_67 : f32 to vector<8x8x8xf32>
    %256 = arith.mulf %254, %255 : vector<8x8x8xf32>
    %cst_68 = arith.constant dense<0xFF800000> : vector<8x8xf32>
    %257 = vector.multi_reduction <maximumf>, %256, %cst_68 [2] : vector<8x8x8xf32> to vector<8x8xf32>
    %258 = vector.shape_cast %257 : vector<8x8xf32> to vector<8x8x1xf32>
    %259 = vector.broadcast %258 : vector<8x8x1xf32> to vector<8x8x8xf32>
    %260 = arith.subf %256, %259 : vector<8x8x8xf32>
    %261 = math.exp %260 : vector<8x8x8xf32>
    %cst_69 = arith.constant dense<0.000000e+00> : vector<8x8xf32>
    %262 = vector.multi_reduction <add>, %261, %cst_69 [2] : vector<8x8x8xf32> to vector<8x8xf32>
    %263 = vector.shape_cast %262 : vector<8x8xf32> to vector<8x8x1xf32>
    %264 = tpu.reciprocal %263 {approx = true} : vector<8x8x1xf32> -> vector<8x8x1xf32>
    %265 = vector.broadcast %264 : vector<8x8x1xf32> to vector<8x8x8xf32>
    %266 = arith.mulf %261, %265 : vector<8x8x8xf32>
    %267 = arith.truncf %266 : vector<8x8x8xf32> to vector<8x8x8xbf16>
    "tpu.trace_start"() <{level = 10 : i32, message = "bqk,bkd->bqd"}> : () -> ()
    %cst_70 = arith.constant dense<0.000000e+00> : vector<8x8x8xf32>
    %268 = tpu.matmul %267, %253, %cst_70 {dimension_numbers = #tpu.dot_dimension_numbers<[2], [1], [1], [2], [0, 0, 0, 1, 1, 2], [0], [0]>} : vector<8x8x8xbf16>, vector<8x8x8xbf16>, vector<8x8x8xf32> -> vector<8x8x8xf32>
    "tpu.trace_stop"() : () -> ()
    %269 = vector.shape_cast %268 : vector<8x8x8xf32> to vector<4x16x8xf32>
    %270 = arith.truncf %269 : vector<4x16x8xf32> to vector<4x16x8xbf16>
    %271 = vector.shape_cast %211 : vector<32x32xbf16> to vector<4x8x32xbf16>
    "tpu.trace_start"() <{level = 10 : i32, message = "hqd,hdo->hqo"}> : () -> ()
    %cst_71 = arith.constant dense<0.000000e+00> : vector<4x16x32xf32>
    %272 = tpu.matmul %270, %271, %cst_71 {dimension_numbers = #tpu.dot_dimension_numbers<[2], [1], [1], [2], [0, 0, 0, 1, 1, 2], [0], [0]>} : vector<4x16x8xbf16>, vector<4x8x32xbf16>, vector<4x16x32xf32> -> vector<4x16x32xf32>
    "tpu.trace_stop"() : () -> ()
    %cst_72 = arith.constant dense<0.000000e+00> : vector<16x32xf32>
    %273 = vector.multi_reduction <add>, %272, %cst_72 [0] : vector<4x16x32xf32> to vector<16x32xf32>
    %274 = vector.extract_strided_slice %207 {offsets = [1, 0], sizes = [1, 32], strides = [1, 1]} : vector<8x128xf32> to vector<1x32xf32>
    %275 = vector.broadcast %274 : vector<1x32xf32> to vector<16x32xf32>
    %276 = arith.addf %273, %275 : vector<16x32xf32>
    %277 = arith.addf %204, %276 : vector<16x32xf32>
    %278 = vector.extract_strided_slice %207 {offsets = [4, 0], sizes = [1, 32], strides = [1, 1]} : vector<8x128xf32> to vector<1x32xf32>
    %279 = vector.extract_strided_slice %207 {offsets = [5, 0], sizes = [1, 32], strides = [1, 1]} : vector<8x128xf32> to vector<1x32xf32>
    %cst_73 = arith.constant dense<0.000000e+00> : vector<16xf32>
    %280 = vector.multi_reduction <add>, %277, %cst_73 [1] : vector<16x32xf32> to vector<16xf32>
    %281 = vector.shape_cast %280 : vector<16xf32> to vector<16x1xf32>
    %cst_74 = arith.constant 3.200000e+01 : f32
    %282 = vector.broadcast %cst_74 : f32 to vector<16x1xf32>
    %283 = arith.divf %281, %282 : vector<16x1xf32>
    %284 = vector.broadcast %283 : vector<16x1xf32> to vector<16x32xf32>
    %285 = arith.subf %277, %284 : vector<16x32xf32>
    %286 = arith.mulf %285, %285 : vector<16x32xf32>
    %cst_75 = arith.constant dense<0.000000e+00> : vector<16xf32>
    %287 = vector.multi_reduction <add>, %286, %cst_75 [1] : vector<16x32xf32> to vector<16xf32>
    %288 = vector.shape_cast %287 : vector<16xf32> to vector<16x1xf32>
    %cst_76 = arith.constant 3.200000e+01 : f32
    %289 = vector.broadcast %cst_76 : f32 to vector<16x1xf32>
    %290 = arith.divf %288, %289 : vector<16x1xf32>
    %291 = vector.broadcast %283 : vector<16x1xf32> to vector<16x32xf32>
    %292 = arith.subf %277, %291 : vector<16x32xf32>
    %cst_77 = arith.constant 9.99999996E-13 : f32
    %293 = vector.broadcast %cst_77 : f32 to vector<16x1xf32>
    %294 = arith.addf %290, %293 : vector<16x1xf32>
    %295 = math.rsqrt %294 : vector<16x1xf32>
    %296 = vector.broadcast %295 : vector<16x1xf32> to vector<16x32xf32>
    %297 = arith.mulf %292, %296 : vector<16x32xf32>
    %298 = vector.broadcast %278 : vector<1x32xf32> to vector<16x32xf32>
    %299 = arith.mulf %297, %298 : vector<16x32xf32>
    %300 = vector.broadcast %279 : vector<1x32xf32> to vector<16x32xf32>
    %301 = arith.addf %299, %300 : vector<16x32xf32>
    %302 = arith.truncf %301 : vector<16x32xf32> to vector<16x32xbf16>
    %cst_78 = arith.constant dense<0.000000e+00> : vector<16x64xf32>
    %303 = tpu.matmul %302, %213, %cst_78 {dimension_numbers = #tpu.dot_dimension_numbers<[1], [0], [0], [1], [0, 0, 1, 1], [], []>} : vector<16x32xbf16>, vector<32x64xbf16>, vector<16x64xf32> -> vector<16x64xf32>
    %304 = vector.extract_strided_slice %207 {offsets = [2, 0], sizes = [1, 64], strides = [1, 1]} : vector<8x128xf32> to vector<1x64xf32>
    %305 = vector.broadcast %304 : vector<1x64xf32> to vector<16x64xf32>
    %306 = arith.addf %303, %305 : vector<16x64xf32>
    %cst_79 = arith.constant 5.000000e-01 : f32
    %307 = vector.broadcast %cst_79 : f32 to vector<16x64xf32>
    %308 = arith.mulf %307, %306 : vector<16x64xf32>
    %cst_80 = arith.constant 4.471500e-02 : f32
    %309 = vector.broadcast %cst_80 : f32 to vector<16x64xf32>
    %310 = arith.mulf %309, %306 : vector<16x64xf32>
    %311 = arith.mulf %310, %306 : vector<16x64xf32>
    %312 = arith.mulf %311, %306 : vector<16x64xf32>
    %313 = arith.addf %306, %312 : vector<16x64xf32>
    %cst_81 = arith.constant 0.797884583 : f32
    %314 = vector.broadcast %cst_81 : f32 to vector<16x64xf32>
    %315 = arith.mulf %314, %313 : vector<16x64xf32>
    %316 = math.tanh %315 : vector<16x64xf32>
    %cst_82 = arith.constant 1.000000e+00 : f32
    %317 = vector.broadcast %cst_82 : f32 to vector<16x64xf32>
    %318 = arith.addf %317, %316 : vector<16x64xf32>
    %319 = arith.mulf %308, %318 : vector<16x64xf32>
    %320 = arith.truncf %319 : vector<16x64xf32> to vector<16x64xbf16>
    %cst_83 = arith.constant dense<0.000000e+00> : vector<16x32xf32>
    %321 = tpu.matmul %320, %215, %cst_83 {dimension_numbers = #tpu.dot_dimension_numbers<[1], [0], [0], [1], [0, 0, 1, 1], [], []>} : vector<16x64xbf16>, vector<64x32xbf16>, vector<16x32xf32> -> vector<16x32xf32>
    %322 = vector.extract_strided_slice %207 {offsets = [3, 0], sizes = [1, 32], strides = [1, 1]} : vector<8x128xf32> to vector<1x32xf32>
    %323 = vector.broadcast %322 : vector<1x32xf32> to vector<16x32xf32>
    %324 = arith.addf %321, %323 : vector<16x32xf32>
    %325 = arith.addf %301, %324 : vector<16x32xf32>
    %326 = vector.extract_strided_slice %207 {offsets = [6, 0], sizes = [1, 32], strides = [1, 1]} : vector<8x128xf32> to vector<1x32xf32>
    %327 = vector.extract_strided_slice %207 {offsets = [7, 0], sizes = [1, 32], strides = [1, 1]} : vector<8x128xf32> to vector<1x32xf32>
    %cst_84 = arith.constant dense<0.000000e+00> : vector<16xf32>
    %328 = vector.multi_reduction <add>, %325, %cst_84 [1] : vector<16x32xf32> to vector<16xf32>
    %329 = vector.shape_cast %328 : vector<16xf32> to vector<16x1xf32>
    %cst_85 = arith.constant 3.200000e+01 : f32
    %330 = vector.broadcast %cst_85 : f32 to vector<16x1xf32>
    %331 = arith.divf %329, %330 : vector<16x1xf32>
    %332 = vector.broadcast %331 : vector<16x1xf32> to vector<16x32xf32>
    %333 = arith.subf %325, %332 : vector<16x32xf32>
    %334 = arith.mulf %333, %333 : vector<16x32xf32>
    %cst_86 = arith.constant dense<0.000000e+00> : vector<16xf32>
    %335 = vector.multi_reduction <add>, %334, %cst_86 [1] : vector<16x32xf32> to vector<16xf32>
    %336 = vector.shape_cast %335 : vector<16xf32> to vector<16x1xf32>
    %cst_87 = arith.constant 3.200000e+01 : f32
    %337 = vector.broadcast %cst_87 : f32 to vector<16x1xf32>
    %338 = arith.divf %336, %337 : vector<16x1xf32>
    %339 = vector.broadcast %331 : vector<16x1xf32> to vector<16x32xf32>
    %340 = arith.subf %325, %339 : vector<16x32xf32>
    %cst_88 = arith.constant 9.99999996E-13 : f32
    %341 = vector.broadcast %cst_88 : f32 to vector<16x1xf32>
    %342 = arith.addf %338, %341 : vector<16x1xf32>
    %343 = math.rsqrt %342 : vector<16x1xf32>
    %344 = vector.broadcast %343 : vector<16x1xf32> to vector<16x32xf32>
    %345 = arith.mulf %340, %344 : vector<16x32xf32>
    %346 = vector.broadcast %326 : vector<1x32xf32> to vector<16x32xf32>
    %347 = arith.mulf %345, %346 : vector<16x32xf32>
    %348 = vector.broadcast %327 : vector<1x32xf32> to vector<16x32xf32>
    %349 = arith.addf %347, %348 : vector<16x32xf32>
    %350 = arith.truncf %349 : vector<16x32xf32> to vector<16x32xbf16>
    %c0_89 = arith.constant 0 : index
    %c0_90 = arith.constant 0 : index
    %351 = vector.load %arg4[%c0_89, %c0_90] : memref<32x128xbf16, #tpu.memory_space<vmem>>, vector<32x128xbf16>
    %cst_91 = arith.constant dense<0.000000e+00> : vector<16x128xf32>
    %352 = tpu.matmul %350, %351, %cst_91 {dimension_numbers = #tpu.dot_dimension_numbers<[1], [0], [0], [1], [0, 0, 1, 1], [], []>} : vector<16x32xbf16>, vector<32x128xbf16>, vector<16x128xf32> -> vector<16x128xf32>
    %353 = vector.extract_strided_slice %35 {offsets = [2, 0], sizes = [1, 128], strides = [1, 1]} : vector<3x128xf32> to vector<1x128xf32>
    %354 = vector.broadcast %353 : vector<1x128xf32> to vector<16x128xf32>
    %355 = arith.addf %352, %354 : vector<16x128xf32>
    %cst_92 = arith.constant dense<0xFF800000> : vector<16xf32>
    %356 = vector.multi_reduction <maximumf>, %355, %cst_92 [1] : vector<16x128xf32> to vector<16xf32>
    %357 = vector.shape_cast %356 : vector<16xf32> to vector<16x1xf32>
    %358 = vector.broadcast %357 : vector<16x1xf32> to vector<16x128xf32>
    %359 = arith.subf %355, %358 : vector<16x128xf32>
    %360 = math.exp %359 : vector<16x128xf32>
    %cst_93 = arith.constant dense<0.000000e+00> : vector<16xf32>
    %361 = vector.multi_reduction <add>, %360, %cst_93 [1] : vector<16x128xf32> to vector<16xf32>
    %362 = vector.shape_cast %361 : vector<16xf32> to vector<16x1xf32>
    %363 = vector.broadcast %362 : vector<16x1xf32> to vector<16x128xf32>
    %364 = arith.divf %360, %363 : vector<16x128xf32>
    %c0_94 = arith.constant 0 : index
    %c0_95 = arith.constant 0 : index
    %365 = vector.load %arg7[%c0_94, %c0_95] : memref<16x128xf32, #tpu.memory_space<vmem>>, vector<16x128xf32>
    tpu.vector_store %arg7[%c0_94, %c0_95], %364 {strides = array<i32>} : memref<16x128xf32, #tpu.memory_space<vmem>>, vector<16x128xf32>,
    return
  }
  func.func @transform_0(%arg0: i32) -> (i32, i32) {
    %c0_i32 = arith.constant 0 : i32
    %c0_i32_0 = arith.constant 0 : i32
    return %arg0, %c0_i32 : i32, i32
  }
  func.func @transform_1(%arg0: i32) -> (i32, i32, i32) {
    %c0_i32 = arith.constant 0 : i32
    %c0_i32_0 = arith.constant 0 : i32
    %c0_i32_1 = arith.constant 0 : i32
    %c0_i32_2 = arith.constant 0 : i32
    return %c0_i32, %c0_i32_0, %c0_i32_1 : i32, i32, i32
  }
  func.func @transform_2(%arg0: i32) -> (i32, i32) {
    %c0_i32 = arith.constant 0 : i32
    %c0_i32_0 = arith.constant 0 : i32
    %c0_i32_1 = arith.constant 0 : i32
    return %c0_i32, %c0_i32_0 : i32, i32
  }
  func.func @transform_3(%arg0: i32) -> (i32, i32) {
    %c0_i32 = arith.constant 0 : i32
    %c0_i32_0 = arith.constant 0 : i32
    %c0_i32_1 = arith.constant 0 : i32
    return %c0_i32, %c0_i32_0 : i32, i32
  }
  func.func @transform_4(%arg0: i32) -> (i32, i32, i32) {
    %c0_i32 = arith.constant 0 : i32
    %c0_i32_0 = arith.constant 0 : i32
    %c0_i32_1 = arith.constant 0 : i32
    %c0_i32_2 = arith.constant 0 : i32
    return %c0_i32, %c0_i32_0, %c0_i32_1 : i32, i32, i32
  }
  func.func @transform_5(%arg0: i32) -> (i32, i32) {
    %c0_i32 = arith.constant 0 : i32
    %c0_i32_0 = arith.constant 0 : i32
    %c0_i32_1 = arith.constant 0 : i32
    return %c0_i32, %c0_i32_0 : i32, i32
  }
  func.func @transform_6(%arg0: i32) -> (i32, i32) {
    %c0_i32 = arith.constant 0 : i32
    %c0_i32_0 = arith.constant 0 : i32
    return %arg0, %c0_i32 : i32, i32
  }
}

</mosaic_0001>

<bundles_post_ra>
// kernel: tpu_custom_call.1
= control target key start
LH: loop header
LB: loop body
LE: loop exit
PB: predicated region body
PF: predicated region fallthrough
CT: control target
= control target key end

     0   :  { %11 = vsyncpa [#allocation3], 0  ;;  %s4670_s0 = inlined_call_operand.vmem [shape: s32[16,1], index: 0, kind: input, shape index: {}]   ;;  %s4671_s1 = inlined_call_operand.hbm [shape: bf16[2,64,224], index: 1, kind: input, shape index: {}]   ;;  %s4672_s2 = inlined_call_operand.vmem [shape: bf16[48,32], index: 2, kind: input, shape index: {}]   ;;  %s4673_s3 = inlined_call_operand.vmem [shape: bf16[32,128], index: 3, kind: input, shape index: {}]   ;;  %s4674_s4 = inlined_call_operand.vmem [shape: f32[2,8,128], index: 4, kind: input, shape index: {}]   ;;  %s4675_s5 = inlined_call_operand.vmem [shape: f32[3,128], index: 5, kind: input, shape index: {}]   ;;  %s4676_s6 = inlined_call_operand.hbm [shape: f32[16,128], index: 6, kind: output, shape index: {}]  }
   0x1   :  { %12 = vsyncpa [#allocation4], 0  ;;  %s3920_s21 = smov [#allocation2]   ;;  %s3872_s25 = scalar_lea.hbm %s4671_s1, 2048 }
   0x2   :  { %s20_s22 = sshll.u32 %s3920_s21, 4  ;;  %p3873_p0 = scmp.ne.s32.totalorder %s4671_s1, %s3872_s25  ;;  %s21_s22 = int_to_ptr.vmem [resolvable:$true] %s20_s22 }
   0x3   :  { %p3876_p1 = scmp.lt.u32.totalorder %s3872_s25, %s4671_s1 }
   0x5   :  { %p3878_p2 = pnand %p3876_p1, %p3873_p0 }
   0x7   :  { %3881 = shalt.err (!%p3878_p2)
}
   0x8   :  { %s3882_s30 = scalar_lea.vmem %s21_s22, 2048  ;;  %p3887_p4 = scmp.lt.s32.totalorder %s21_s22, %s21_s22 }
   0x9   :  { %p3883_p3 = scmp.ne.s32.totalorder %s21_s22, %s3882_s30  ;;  %p3888_p5 = scmp.lt.s32.totalorder %s3882_s30, %s3882_s30 }
   0xb   :  { %p3889_p6 = por %p3888_p5, %p3887_p4 }
   0xd   :  { %p3890_p7 = pnand %p3889_p6, %p3883_p3 }
   0xf   :  { %3893 = shalt.err (!%p3890_p7)
}
  0x10   :  { %s3921_s7 = smov 128   ;;  %s3922_s8 = smov 8  }
  0x11   :  { %26 = dma.hbm_to_vmem [thread:$0]  %s4671_s1, 2048, %s21_s22, [#allocation3], %s3921_s7, %s3921_s7, %s3922_s8  }
  0x12   :  { %3916 = dma.done.wait [#allocation3], 2048  }
  0x13   :  { %3917 = vsyncadd [#allocation3], 4294965248  ;;  %v41_v0 = vlaneseq  ;;  %v3923_v1 = vmov 0   ;;  %v3924_v2 = vmov 0.0   ;;  %vm3925_vm0 = vmmov 0   ;;  %v39_v8 = vld [vmem:[%s4670_s0] sm:$0xff] }
  0x14   :  { %3743 = vset.pattern.permute.xlu0 %v3923_v1  ;;  %3408 = vmatprep.subr.bf16.mxu0 %v3924_v2  ;;  %v3744_v10 = vld [vmem:[%s4672_s2 + $0x10] sm:$0xff]   ;;  %v40_v11 = vld [vmem:[%s4670_s0 + $0x8] sm:$0xff]  ;;  %vm102_vm3 = vcmask 130048   ;;  %v3745_v14 = vld [vmem:[%s4672_s2] sm:$0xff]   ;;  %vm159_vm6 = vcmask 261120   ;;  %s3926_s22 = smov 96  }
  0x15   :  { %3410 = vmatprep.mubr.msk.bf16.mxu0 %vm3925_vm0, %v3924_v2  ;;  %v3986_v3 = vshrl.u32 %v41_v0, 7  ;;  %v69_v4 = vand.u32 127, %v41_v0  ;;  %3422 = vmatprep.subr.bf16.mxu1 %v3924_v2  ;;  %v3746_v15 = vld [vmem:[%s4672_s2 + $0x8] sm:$0xff]   ;;  %v4024_v37 = vld [vmem:[#allocation2] sm:$0xf]  ;;  %s3927_s23 = smov 120  }
  0x16   :  { %3426 = vmatprep.mubr.msk.bf16.mxu1 %vm3925_vm0, %v3924_v2  ;;  %71 = vperm.xlu0 %3743, %v39_v8   ;;  %v4026_v38 = vld [vmem:[#allocation2 + $0x8] sm:$0xf]  ;;  %v4028_v39 = vld [vmem:[#allocation2 + $0x10] sm:$0xf]  ;;  %v4032_v41 = vld [vmem:[#allocation2 + $0x18] sm:$0xf] }
  0x17   :  { %v43_v5 = vadd.s32 8, %v3986_v3  ;;  %v48_v6 = vand.u32 7, %v3986_v3  ;;  %3409 = vmatpush3.bf16.msra.mxu0 %v3744_v10  ;;  %v3208_v40 = vcombine.low %v4024_v37, %v4026_v38  ;;  %v3209_v42 = vcombine.low %v4028_v39, %v4032_v41  ;;  %v204_v50 = vld [vmem:[%s4675_s5] sm:$0x7]  ;;  %s3928_s24 = smov 112   ;;  %s3929_s25 = smov 104  }
  0x18   :  { %3414 = vmatprep.subr.bf16.mxu0 %v3924_v2  ;;  %v4039_v49 = vsub.s32 0, %v3986_v3  ;;  %v4046_v54 = vsub.s32 1, %v3986_v3  ;;  %v4061_v63 = vld [vmem:[%s4674_s4] sm:$0xff]  ;;  %vm344_vm7 = vcmask 64512   ;;  %s3930_s26 = smov 64   ;;  %vm836_vm8 = vcmask 1043456  }
  0x19   :  { %v55_v7 = vand.u32 7, %v43_v5  ;;  %vm83_vm1 = vcmp.eq.s32.totalorder %v69_v4, %v48_v6  ;;  %3423 = vmatpush3.bf16.msra.mxu1 %v3208_v40  ;;  %s3931_s27 = smov 32   ;;  %vm1586_vm9 = vcmask 523264  }
  0x1a   :  { %v3201_v9 = vsel %vm83_vm1, 1.0, %v3924_v2  ;;  %74 = vperm.xlu0 %3743, %v40_v11   ;;  %3424 = vmatprep.subr.bf16.mxu1 %v3924_v2  ;;  %v235_v53 = vrot.slane %v204_v50, %v4039_v49  ;;  %v241_v58 = vrot.slane %v204_v50, %v4046_v54  ;;  %v261_v0 = vrot.slane %v4061_v63, %v4039_v49 }
  0x1b   :  { %vm84_vm2 = vcmp.eq.s32.totalorder %v69_v4, %v55_v7 }
  0x1c   :  { %v3202_v12 = vsel %vm84_vm2, 1.0, %v3924_v2 }
  0x1d   :  { %v89_v13 = vpack.c.bf16 %v3202_v12, %v3201_v9  ;;  %3425 = vmatpush3.bf16.msra.mxu1 %v3209_v42 }
  0x1e   :  { %3430 = vmatprep.subr.bf16.mxu1 %v3924_v2 }
  0x1f   :  { %3411 = vmatmul.mubr.msk.bf16.vlgmr.msra.gmra.mrb[0].mxu0 %vm102_vm3, %v89_v13 }
  0x20   :  { %3415 = vmatpush3.bf16.msra.mxu0 %v3745_v14  ;;  %3418 = vmatprep.mubr.msk.bf16.mxu0 %vm3925_vm0, %v3924_v2 }
  0x21   :  { %3416 = vmatprep.subr.bf16.mxu0 %v3924_v2 }
  0x24   :  { %3417 = vmatpush3.bf16.msra.mxu0 %v3746_v15 }
  0x25   :  { %3436 = vmatprep.subr.bf16.mxu0 %v3924_v2 }
  0x95   :  { %v72_v16 = vpop.permute.xlu0 %71 }
  0x96   :  { %vm76_vm4 = vcmp.eq.s32.totalorder %v69_v4, %v72_v16 }
  0x97   :  { %v3199_v18 = vsel %vm76_vm4, 1.0, %v3924_v2 }
  0x99   :  { %v75_v17 = vpop.permute.xlu0 %74 }
  0x9a   :  { %vm77_vm5 = vcmp.eq.s32.totalorder %v69_v4, %v75_v17 }
  0x9b   :  { %v3200_v19 = vsel %vm77_vm5, 1.0, %v3924_v2 }
  0x9c   :  { %v82_v20 = vpack.c.bf16 %v3200_v19, %v3199_v18 }
  0x9e   :  { %3419 = vmatmul.mubr.msk.bf16.vlgmr.msra.gmra.mrb[0].mxu0 %vm159_vm6, %v82_v20 }
  0x9f   :  { %3438 = vmatprep.mubr.msk.bf16.mxu0 %vm3925_vm0, %v3924_v2 }
 0x171   :  { %v197_v21 = vpop.f32.mrb[0].mxu0 }
 0x172   :  { %v3420_v22 = vpop.f32.mrb[1].mxu0  ;;  %v205_v23 = vsel %vm159_vm6, %v197_v21, 0.0 }
 0x173   :  { %206 = vadd.xlane.f32.xlu1 %v205_v23  ;;  %v200_v24 = vpop.f32.mrb[2].mxu0 }
 0x174   :  { %v3421_v25 = vpop.f32.mrb[3].mxu0  ;;  %v208_v26 = vsel %vm159_vm6, %v200_v24, 0.0 }
 0x177   :  { %209 = vadd.xlane.f32.xlu1 %v208_v26 }
 0x200   :  { %v207_v27 = vpop.xlane.xlu1 %206 }
 0x201   :  { %v212_v28 = vmul.f32 0.03125, %v207_v27 }
 0x203   :  { %v214_v29 = vsub.f32 %v197_v21, %v212_v28 }
 0x204   :  { %v210_v30 = vpop.xlane.xlu1 %209 }
 0x205   :  { %v213_v31 = vmul.f32 0.03125, %v210_v30  ;;  %v216_v32 = vmul.f32 %v214_v29, %v214_v29 }
 0x207   :  { %v215_v33 = vsub.f32 %v200_v24, %v213_v31  ;;  %v218_v34 = vsel %vm159_vm6, %v216_v32, 0.0 }
 0x208   :  { %219 = vadd.xlane.f32.xlu0 %v218_v34 }
 0x209   :  { %v217_v35 = vmul.f32 %v215_v33, %v215_v33 }
 0x20b   :  { %v221_v36 = vsel %vm159_vm6, %v217_v35, 0.0 }
 0x20c   :  { %222 = vadd.xlane.f32.xlu1 %v221_v36 }
 0x295   :  { %v220_v43 = vpop.xlane.xlu0 %219 }
 0x296   :  { %v224_v44 = vmul.f32 0.03125, %v220_v43 }
 0x298   :  { %v226_v45 = vadd.f32 1e-12, %v224_v44 }
 0x299   :  { %v223_v46 = vpop.xlane.xlu1 %222 }
 0x29a   :  { %3769 = vrsqrt.f32 %v226_v45  ;;  %v225_v47 = vmul.f32 0.03125, %v223_v46 }
 0x29c   :  { %v227_v48 = vadd.f32 1e-12, %v225_v47 }
 0x29e   :  { %3771 = vrsqrt.f32 %v227_v48 }
 0x2a4   :  { %v3770_v51 = vpop.eup %3769 }
 0x2a5   :  { %v230_v52 = vmul.f32 %v3770_v51, %v214_v29 }
 0x2a7   :  { %v236_v57 = vmul.f32 %v235_v53, %v230_v52 }
 0x2a8   :  { %v3772_v55 = vpop.eup %3771 }
 0x2a9   :  { %v231_v56 = vmul.f32 %v3772_v55, %v215_v33  ;;  %v4049_v60 = vadd.f32 %v241_v58, %v236_v57 }
 0x2ab   :  { %v237_v59 = vmul.f32 %v235_v53, %v231_v56 }
 0x2ad   :  { %v4051_v61 = vadd.f32 %v241_v58, %v237_v59 }
 0x2af   :  { %v244_v62 = vpack.c.bf16 %v4051_v61, %v4049_v60 }
 0x2b1   :  { %3427 = vmatmul.mubr.msk.bf16.vlgmr.msra.gmra.mrb[0].mxu1 %vm159_vm6, %v244_v62 }
 0x2b2   :  { %3432 = vmatprep.mubr.msk.bf16.mxu1 %vm3925_vm0, %v3924_v2 }
 0x384   :  { %v311_v1 = vpop.f32.mrb[0].mxu1 }
 0x385   :  { %v3428_v4 = vpop.f32.mrb[1].mxu1  ;;  %v312_v6 = vadd.f32 %v311_v1, %v261_v0 }
 0x386   :  { %v314_v5 = vpop.f32.mrb[2].mxu1 }
 0x387   :  { %v315_v7 = vadd.f32 %v314_v5, %v261_v0  ;;  %v3429_v8 = vpop.f32.mrb[3].mxu1  ;;  %v3294_v11 = vpack.c.bf16 %v312_v6, %v312_v6 }
 0x389   :  { %v318_v9 = vpack.c.bf16 %v315_v7, %v312_v6  ;;  %v3295_v10 = vpack.c.bf16 %v315_v7, %v315_v7 }
 0x38b   :  { %391 = vrot.lane.b32.xlu0 %v3295_v10, %s3926_s22  ;;  %320 = vrot.lane.b32.xlu1 %v318_v9, %s3927_s23 }
 0x38f   :  { %322 = vrot.lane.b32.xlu1 %v318_v9, %s3928_s24 }
 0x393   :  { %324 = vrot.lane.b32.xlu1 %v318_v9, %s3929_s25 }
 0x397   :  { %342 = vrot.lane.b32.xlu1 %v3294_v11, %s3926_s22 }
 0x3fd   :  { %v392_v12 = vpop.permute.xlu0 %391  ;;  %v321_v13 = vpop.permute.xlu1 %320 }
 0x3fe   :  { %v397_v14 = vsel %vm344_vm7, %v392_v12, 0  ;;  %v4071_v15 = vcombine.low %v321_v13, %v321_v13  ;;  %v4076_v17 = vcombine.high %v321_v13, %v321_v13 }
 0x3ff   :  { %3437 = vmatpush3.bf16.xpose.msra.mxu0 %v397_v14 }
 0x400   :  { %439 = vrot.lane.b32.xlu1 %v4071_v15, %s3926_s22  ;;  %3448 = vmatprep.subr.bf16.mxu0 %v3924_v2 }
 0x401   :  { %v323_v16 = vpop.permute.xlu1 %322 }
 0x402   :  { %v4080_v19 = vcombine.low %v323_v16, %v323_v16  ;;  %v4091_v22 = vcombine.high %v323_v16, %v323_v16 }
 0x404   :  { %487 = vrot.lane.b32.xlu1 %v4076_v17, %s3926_s22 }
 0x405   :  { %v325_v18 = vpop.permute.xlu1 %324 }
 0x406   :  { %v4082_v20 = vcombine.high %v325_v18, %v325_v18  ;;  %3439 = vmatmul.mubr.msk.bf16.vlgmr.msra.gmra.mrb[4].mxu0 %vm344_vm7, %v3295_v10  ;;  %v4098_v24 = vcombine.low %v325_v18, %v325_v18 }
 0x407   :  { %3450 = vmatprep.mubr.msk.bf16.mxu0 %vm3925_vm0, %v3924_v2 }
 0x408   :  { %535 = vrot.lane.b32.xlu1 %v4080_v19, %s3926_s22  ;;  %679 = vrot.lane.b32.xlu0 %v4082_v20, %s3926_s22 }
 0x409   :  { %v343_v21 = vpop.permute.xlu1 %342 }
 0x40a   :  { %v349_v23 = vsel %vm344_vm7, %v343_v21, 0 }
 0x40b   :  { %3431 = vmatpush3.bf16.xpose.msra.mxu1 %v349_v23 }
 0x40c   :  { %583 = vrot.lane.b32.xlu1 %v4091_v22, %s3926_s22  ;;  %831 = vrot.lane.b32.xlu0 %v3294_v11, %s3930_s26 }
 0x40d   :  { %3442 = vmatprep.subr.bf16.mxu1 %v3924_v2 }
 0x410   :  { %631 = vrot.lane.b32.xlu1 %v4098_v24, %s3926_s22 }
 0x412   :  { %3433 = vmatmul.mubr.msk.bf16.vlgmr.msra.gmra.mrb[4].mxu1 %vm344_vm7, %v3294_v11 }
 0x413   :  { %3444 = vmatprep.mubr.msk.bf16.mxu1 %vm3925_vm0, %v3924_v2 }
 0x414   :  { %880 = vrot.lane.b32.xlu1 %v3295_v10, %s3930_s26 }
 0x472   :  { %v440_v25 = vpop.permute.xlu1 %439 }
 0x473   :  { %v445_v26 = vsel %vm344_vm7, %v440_v25, 0 }
 0x474   :  { %3443 = vmatpush3.bf16.xpose.msra.mxu1 %v445_v26 }
 0x475   :  { %3454 = vmatprep.subr.bf16.mxu1 %v3924_v2 }
 0x476   :  { %v488_v27 = vpop.permute.xlu1 %487 }
 0x477   :  { %v493_v28 = vsel %vm344_vm7, %v488_v27, 0 }
 0x478   :  { %3449 = vmatpush3.bf16.xpose.msra.mxu0 %v493_v28 }
 0x479   :  { %3460 = vmatprep.subr.bf16.mxu0 %v3924_v2 }
 0x47a   :  { %v536_v29 = vpop.permute.xlu1 %535  ;;  %v680_v33 = vpop.permute.xlu0 %679 }
 0x47b   :  { %v541_v30 = vsel %vm344_vm7, %v536_v29, 0  ;;  %3445 = vmatmul.mubr.msk.bf16.vlgmr.msra.gmra.mrb[8].mxu1 %vm344_vm7, %v4071_v15  ;;  %v685_v36 = vsel %vm344_vm7, %v680_v33, 0 }
 0x47c   :  { %3455 = vmatpush3.bf16.xpose.msra.mxu1 %v541_v30  ;;  %3456 = vmatprep.mubr.msk.bf16.mxu1 %vm3925_vm0, %v3924_v2 }
 0x47d   :  { %3466 = vmatprep.subr.bf16.mxu1 %v3924_v2 }
 0x47e   :  { %v584_v31 = vpop.permute.xlu1 %583  ;;  %v832_v40 = vpop.permute.xlu0 %831 }
 0x47f   :  { %v589_v32 = vsel %vm344_vm7, %v584_v31, 0  ;;  %3451 = vmatmul.mubr.msk.bf16.vlgmr.msra.gmra.mrb[8].mxu0 %vm344_vm7, %v4076_v17  ;;  %v838_v42 = vsel %vm836_vm8, %v832_v40, 0 }
 0x480   :  { %3461 = vmatpush3.bf16.xpose.msra.mxu0 %v589_v32  ;;  %3462 = vmatprep.mubr.msk.bf16.mxu0 %vm3925_vm0, %v3924_v2 }
 0x481   :  { %3472 = vmatprep.subr.bf16.mxu0 %v3924_v2 }
 0x482   :  { %v632_v34 = vpop.permute.xlu1 %631 }
 0x483   :  { %v637_v35 = vsel %vm344_vm7, %v632_v34, 0  ;;  %3457 = vmatmul.mubr.msk.bf16.vlgmr.msra.gmra.mrb[12].mxu1 %vm344_vm7, %v4080_v19 }
 0x484   :  { %3467 = vmatpush3.bf16.xpose.msra.mxu1 %v637_v35  ;;  %3468 = vmatprep.mubr.msk.bf16.mxu1 %vm3925_vm0, %v3924_v2 }
 0x485   :  { %3478 = vmatprep.subr.bf16.mxu1 %v3924_v2 }
 0x486   :  { %v881_v43 = vpop.permute.xlu1 %880 }
 0x487   :  { %3463 = vmatmul.mubr.msk.bf16.vlgmr.msra.gmra.mrb[12].mxu0 %vm344_vm7, %v4091_v22  ;;  %v886_v44 = vsel %vm836_vm8, %v881_v43, 0 }
 0x488   :  { %3473 = vmatpush3.bf16.xpose.msra.mxu0 %v685_v36  ;;  %3474 = vmatprep.mubr.msk.bf16.mxu0 %vm3925_vm0, %v3924_v2 }
 0x489   :  { %3484 = vmatprep.subr.bf16.mxu0 %v3924_v2 }
 0x48b   :  { %3469 = vmatmul.mubr.msk.bf16.vlgmr.msra.gmra.mrb[16].mxu1 %vm344_vm7, %v4098_v24 }
 0x48c   :  { %3479 = vmatpush3.bf16.msra.mxu1 %v838_v42  ;;  %3480 = vmatprep.mubr.msk.bf16.mxu1 %vm3925_vm0, %v3924_v2 }
 0x48d   :  { %3490 = vmatprep.subr.bf16.mxu1 %v3924_v2 }
 0x48f   :  { %3475 = vmatmul.mubr.msk.bf16.vlgmr.msra.gmra.mrb[16].mxu0 %vm344_vm7, %v4082_v20 }
 0x490   :  { %3485 = vmatpush3.bf16.msra.mxu0 %v886_v44  ;;  %3486 = vmatprep.mubr.msk.bf16.mxu0 %vm3925_vm0, %v3924_v2 }
 0x491   :  { %3496 = vmatprep.subr.bf16.mxu0 %v3924_v2 }
 0x4d9   :  { %v433_v45 = vpop.f32.mrb[4].mxu0 }
 0x4da   :  { %v728_v46 = vmul.f32 0.35355338, %v433_v45  ;;  %v3440_v47 = vpop.f32.mrb[5].mxu0 }
 0x4db   :  { %v436_v48 = vpop.f32.mrb[6].mxu0 }
 0x4dc   :  { %v3441_v50 = vpop.f32.mrb[7].mxu0  ;;  %v738_v51 = vsel %vm344_vm7, %v728_v46, -inf }
 0x4dd   :  { %739 = vmax.xlane.f32.xlu0 %v738_v51 }
 0x4e5   :  { %v385_v52 = vpop.f32.mrb[4].mxu1 }
 0x4e6   :  { %v727_v53 = vmul.f32 0.35355338, %v385_v52  ;;  %v3434_v55 = vpop.f32.mrb[5].mxu1 }
 0x4e7   :  { %v388_v56 = vpop.f32.mrb[6].mxu1 }
 0x4e8   :  { %v3435_v57 = vpop.f32.mrb[7].mxu1  ;;  %v735_v58 = vsel %vm344_vm7, %v727_v53, -inf }
 0x4e9   :  { %736 = vmax.xlane.f32.xlu1 %v735_v58 }
 0x54e   :  { %v481_v59 = vpop.f32.mrb[8].mxu1 }
 0x54f   :  { %v729_v62 = vmul.f32 0.35355338, %v481_v59  ;;  %v3446_v0 = vpop.f32.mrb[9].mxu1 }
 0x550   :  { %v484_v1 = vpop.f32.mrb[10].mxu1 }
 0x551   :  { %v3447_v4 = vpop.f32.mrb[11].mxu1  ;;  %v741_v5 = vsel %vm344_vm7, %v729_v62, -inf }
 0x552   :  { %742 = vmax.xlane.f32.xlu0 %v741_v5  ;;  %v529_v6 = vpop.f32.mrb[8].mxu0 }
 0x553   :  { %v730_v7 = vmul.f32 0.35355338, %v529_v6  ;;  %v3452_v8 = vpop.f32.mrb[9].mxu0 }
 0x554   :  { %v532_v9 = vpop.f32.mrb[10].mxu0 }
 0x555   :  { %v3453_v10 = vpop.f32.mrb[11].mxu0  ;;  %v744_v11 = vsel %vm344_vm7, %v730_v7, -inf }
 0x556   :  { %v577_v12 = vpop.f32.mrb[12].mxu1  ;;  %745 = vmax.xlane.f32.xlu1 %v744_v11 }
 0x557   :  { %v4150_v13 = vmul.f32 0.35355338, %v577_v12  ;;  %v3458_v14 = vpop.f32.mrb[13].mxu1 }
 0x558   :  { %v580_v16 = vpop.f32.mrb[14].mxu1 }
 0x559   :  { %v3459_v18 = vpop.f32.mrb[15].mxu1  ;;  %v747_v21 = vsel %vm344_vm7, %v4150_v13, -inf }
 0x55a   :  { %748 = vmax.xlane.f32.xlu0 %v747_v21  ;;  %v625_v23 = vpop.f32.mrb[12].mxu0 }
 0x55b   :  { %v732_v25 = vmul.f32 0.35355338, %v625_v23  ;;  %v3464_v26 = vpop.f32.mrb[13].mxu0 }
 0x55c   :  { %v628_v27 = vpop.f32.mrb[14].mxu0 }
 0x55d   :  { %v3465_v28 = vpop.f32.mrb[15].mxu0  ;;  %v750_v29 = vsel %vm344_vm7, %v732_v25, -inf }
 0x55e   :  { %v673_v30 = vpop.f32.mrb[16].mxu1  ;;  %751 = vmax.xlane.f32.xlu1 %v750_v29  ;;  %v3235_v28 = vcombine.low %v4024_v37, %v4024_v37 }
 0x55f   :  { %v4155_v31 = vmul.f32 0.35355338, %v673_v30  ;;  %v3470_v32 = vpop.f32.mrb[17].mxu1 }
 0x560   :  { %v676_v33 = vpop.f32.mrb[18].mxu1 }
 0x561   :  { %v3471_v34 = vpop.f32.mrb[19].mxu1  ;;  %v753_v35 = vsel %vm344_vm7, %v4155_v31, -inf }
 0x562   :  { %754 = vmax.xlane.f32.xlu0 %v753_v35  ;;  %v721_v36 = vpop.f32.mrb[16].mxu0 }
 0x563   :  { %v734_v40 = vmul.f32 0.35355338, %v721_v36  ;;  %v3476_v42 = vpop.f32.mrb[17].mxu0 }
 0x564   :  { %v724_v43 = vpop.f32.mrb[18].mxu0 }
 0x565   :  { %v3477_v44 = vpop.f32.mrb[19].mxu0  ;;  %v756_v45 = vsel %vm344_vm7, %v734_v40, -inf }
 0x566   :  { %757 = vmax.xlane.f32.xlu1 %v756_v45 }
 0x56a   :  { %v740_v50 = vpop.xlane.xlu0 %739 }
 0x56b   :  { %v760_v51 = vsub.f32 %v728_v46, %v740_v50 }
 0x56d   :  { %v769_v55 = vmul.f32 1.442695, %v760_v51 }
 0x576   :  { %v737_v47 = vpop.xlane.xlu1 %736 }
 0x577   :  { %928 = vrot.lane.b32.xlu1 %v4071_v15, %s3930_s26  ;;  %v759_v48 = vsub.f32 %v727_v53, %v737_v47  ;;  %v3237_v47 = vcombine.low %v4026_v38, %v4026_v38 }
 0x578   :  { %976 = vrot.lane.b32.xlu0 %v4076_v17, %s3930_s26 }
 0x579   :  { %v767_v52 = vmul.f32 1.442695, %v759_v48 }
 0x57b   :  { %3773 = vpow2.f32 %v767_v52 }
 0x57c   :  { %3775 = vpow2.f32 %v769_v55 }
 0x585   :  { %v3774_v56 = vpop.eup %3773 }
 0x586   :  { %v783_v57 = vsel %vm344_vm7, %v3774_v56, 0.0  ;;  %v4165_v58 = vpop.eup %3775 }
 0x587   :  { %v786_v15 = vsel %vm344_vm7, %v4165_v58, 0.0 }
 0x597   :  { %784 = vadd.xlane.f32.xlu0 %v783_v57 }
 0x59b   :  { %787 = vadd.xlane.f32.xlu1 %v786_v15 }
 0x5ac   :  { %1024 = vrot.lane.b32.xlu1 %v4080_v19, %s3930_s26 }
 0x5df   :  { %v743_v17 = vpop.xlane.xlu0 %742 }
 0x5e0   :  { %v761_v53 = vsub.f32 %v729_v62, %v743_v17  ;;  %v3239_v17 = vcombine.low %v4028_v39, %v4028_v39 }
 0x5e2   :  { %v771_v46 = vmul.f32 1.442695, %v761_v53  ;;  %v3241_v53 = vcombine.low %v4032_v41, %v4032_v41 }
 0x5e3   :  { %v746_v59 = vpop.xlane.xlu1 %745 }
 0x5e4   :  { %3777 = vpow2.f32 %v771_v46  ;;  %v762_v0 = vsub.f32 %v730_v7, %v746_v59 }
 0x5e6   :  { %v773_v1 = vmul.f32 1.442695, %v762_v0 }
 0x5e7   :  { %v749_v21 = vpop.xlane.xlu0 %748 }
 0x5e8   :  { %3779 = vpow2.f32 %v773_v1  ;;  %v763_v23 = vsub.f32 %v4150_v13, %v749_v21 }
 0x5ea   :  { %v775_v26 = vmul.f32 1.442695, %v763_v23 }
 0x5eb   :  { %v752_v4 = vpop.xlane.xlu1 %751 }
 0x5ec   :  { %v764_v5 = vsub.f32 %v732_v25, %v752_v4 }
 0x5ee   :  { %v4171_v6 = vpop.eup %3777  ;;  %v777_v8 = vmul.f32 1.442695, %v764_v5 }
 0x5ef   :  { %v789_v9 = vsel %vm344_vm7, %v4171_v6, 0.0  ;;  %v755_v25 = vpop.xlane.xlu0 %754 }
 0x5f0   :  { %3781 = vpow2.f32 %v777_v8  ;;  %790 = vadd.xlane.f32.xlu0 %v789_v9  ;;  %v765_v27 = vsub.f32 %v4155_v31, %v755_v25 }
 0x5f2   :  { %v4175_v10 = vpop.eup %3779  ;;  %v779_v29 = vmul.f32 1.442695, %v765_v27 }
 0x5f3   :  { %v758_v19 = vpop.xlane.xlu1 %757  ;;  %v792_v62 = vsel %vm344_vm7, %v4175_v10, 0.0 }
 0x5f4   :  { %v766_v11 = vsub.f32 %v734_v40, %v758_v19  ;;  %793 = vadd.xlane.f32.xlu1 %v792_v62 }
 0x5f6   :  { %v781_v7 = vmul.f32 1.442695, %v766_v11 }
 0x5f7   :  { %v929_v13 = vpop.permute.xlu1 %928 }
 0x5f8   :  { %3783 = vpow2.f32 %v781_v7  ;;  %v934_v42 = vsel %vm836_vm8, %v929_v13, 0 }
 0x5f9   :  { %3785 = vpow2.f32 %v775_v26 }
 0x5fa   :  { %v4179_v12 = vpop.eup %3781  ;;  %3787 = vpow2.f32 %v779_v29 }
 0x5fb   :  { %v798_v14 = vsel %vm344_vm7, %v4179_v12, 0.0 }
 0x5fc   :  { %799 = vadd.xlane.f32.xlu1 %v798_v14 }
 0x602   :  { %v4183_v16 = vpop.eup %3783 }
 0x603   :  { %v804_v18 = vsel %vm344_vm7, %v4183_v16, 0.0  ;;  %v4196_v30 = vpop.eup %3785 }
 0x604   :  { %805 = vadd.xlane.f32.xlu1 %v804_v18  ;;  %v795_v31 = vsel %vm344_vm7, %v4196_v30, 0.0  ;;  %v4200_v33 = vpop.eup %3787 }
 0x606   :  { %1072 = vrot.lane.b32.xlu0 %v4091_v22, %s3930_s26  ;;  %v977_v22 = vpop.permute.xlu0 %976 }
 0x607   :  { %v982_v45 = vsel %vm836_vm8, %v977_v22, 0 }
 0x615   :  { %1120 = vrot.lane.b32.xlu1 %v4098_v24, %s3930_s26  ;;  %v801_v24 = vsel %vm344_vm7, %v4200_v33, 0.0 }
 0x619   :  { %1221 = vrot.lane.b32.xlu1 %v3235_v28, %s3931_s27 }
 0x61d   :  { %1321 = vrot.lane.b32.xlu1 %v3239_v17, %s3931_s27 }
 0x624   :  { %v785_v32 = vpop.xlane.xlu0 %784 }
 0x625   :  { %3789 = vrcp.f32 %v785_v32  ;;  %796 = vadd.xlane.f32.xlu0 %v795_v31 }
 0x628   :  { %v788_v37 = vpop.xlane.xlu1 %787 }
 0x629   :  { %3791 = vrcp.f32 %v788_v37  ;;  %802 = vadd.xlane.f32.xlu0 %v801_v24 }
 0x62c   :  { %v1025_v48 = vpop.permute.xlu1 %1024 }
 0x62d   :  { %v1030_v15 = vsel %vm836_vm8, %v1025_v48, 0 }
 0x62f   :  { %v3790_v34 = vpop.eup %3789 }
 0x630   :  { %v815_v35 = vmul.f32 %v3790_v34, %v3774_v56 }
 0x632   :  { %v823_v36 = vpack.c.bf16 %v815_v35, %v815_v35 }
 0x633   :  { %v3792_v40 = vpop.eup %3791 }
 0x634   :  { %v816_v43 = vmul.f32 %v3792_v40, %v4165_v58  ;;  %3481 = vmatmul.mubr.msk.bf16.vlgmr.msra.gmra.mrb[20].mxu1 %vm344_vm7, %v823_v36 }
 0x635   :  { %3491 = vmatpush3.bf16.msra.mxu1 %v934_v42  ;;  %3492 = vmatprep.mubr.msk.bf16.mxu1 %vm3925_vm0, %v3924_v2 }
 0x636   :  { %v824_v44 = vpack.c.bf16 %v816_v43, %v816_v43  ;;  %3502 = vmatprep.subr.bf16.mxu1 %v3924_v2 }
 0x638   :  { %3487 = vmatmul.mubr.msk.bf16.vlgmr.msra.gmra.mrb[20].mxu0 %vm344_vm7, %v824_v44 }
 0x639   :  { %3497 = vmatpush3.bf16.msra.mxu0 %v982_v45  ;;  %3498 = vmatprep.mubr.msk.bf16.mxu0 %vm3925_vm0, %v3924_v2 }
 0x63a   :  { %3508 = vmatprep.subr.bf16.mxu0 %v3924_v2 }
 0x63f   :  { %1168 = vrot.lane.b32.xlu0 %v4082_v20, %s3930_s26 }
 0x643   :  { %1271 = vrot.lane.b32.xlu0 %v3237_v47, %s3931_s27 }
 0x647   :  { %1371 = vrot.lane.b32.xlu0 %v3241_v53, %s3931_s27 }
 0x67d   :  { %v791_v50 = vpop.xlane.xlu0 %790 }
 0x67e   :  { %3793 = vrcp.f32 %v791_v50 }
 0x681   :  { %v794_v51 = vpop.xlane.xlu1 %793  ;;  %v1073_v20 = vpop.permute.xlu0 %1072 }
 0x682   :  { %3795 = vrcp.f32 %v794_v51  ;;  %v1078_v59 = vsel %vm836_vm8, %v1073_v20, 0 }
 0x688   :  { %v3794_v52 = vpop.eup %3793 }
 0x689   :  { %v817_v55 = vmul.f32 %v3794_v52, %v4171_v6  ;;  %v800_v56 = vpop.xlane.xlu1 %799 }
 0x68a   :  { %3797 = vrcp.f32 %v800_v56 }
 0x68b   :  { %v825_v57 = vpack.c.bf16 %v817_v55, %v817_v55 }
 0x68c   :  { %v3796_v58 = vpop.eup %3795 }
 0x68d   :  { %v818_v38 = vmul.f32 %v3796_v58, %v4175_v10  ;;  %3493 = vmatmul.mubr.msk.bf16.vlgmr.msra.gmra.mrb[24].mxu1 %vm344_vm7, %v825_v57 }
 0x68e   :  { %3503 = vmatpush3.bf16.msra.mxu1 %v1030_v15  ;;  %3504 = vmatprep.mubr.msk.bf16.mxu1 %vm3925_vm0, %v3924_v2 }
 0x68f   :  { %v826_v46 = vpack.c.bf16 %v818_v38, %v818_v38  ;;  %3514 = vmatprep.subr.bf16.mxu1 %v3924_v2 }
 0x691   :  { %3499 = vmatmul.mubr.msk.bf16.vlgmr.msra.gmra.mrb[24].mxu0 %vm344_vm7, %v826_v46  ;;  %v806_v1 = vpop.xlane.xlu1 %805 }
 0x692   :  { %3509 = vmatpush3.bf16.msra.mxu0 %v1078_v59  ;;  %3510 = vmatprep.mubr.msk.bf16.mxu0 %vm3925_vm0, %v3924_v2  ;;  %3799 = vrcp.f32 %v806_v1 }
 0x693   :  { %3520 = vmatprep.subr.bf16.mxu0 %v3924_v2 }
 0x694   :  { %v3798_v39 = vpop.eup %3797 }
 0x695   :  { %v820_v41 = vmul.f32 %v3798_v39, %v4179_v12  ;;  %v1121_v7 = vpop.permute.xlu1 %1120 }
 0x697   :  { %v828_v0 = vpack.c.bf16 %v820_v41, %v820_v41 }
 0x699   :  { %3511 = vmatmul.mubr.msk.bf16.vlgmr.msra.gmra.mrb[28].mxu0 %vm344_vm7, %v828_v0  ;;  %v1222_v21 = vpop.permute.xlu1 %1221 }
 0x69a   :  { %3522 = vmatprep.mubr.msk.bf16.mxu0 %vm3925_vm0, %v3924_v2  ;;  %v1227_v25 = vsel %vm836_vm8, %v1222_v21, 0 }
 0x69c   :  { %v3800_v5 = vpop.eup %3799 }
 0x69d   :  { %v822_v8 = vmul.f32 %v3800_v5, %v4183_v16  ;;  %v1126_v16 = vsel %vm836_vm8, %v1121_v7, 0  ;;  %v1322_v24 = vpop.permute.xlu1 %1321 }
 0x69e   :  { %v1327_v34 = vsel %vm836_vm8, %v1322_v24, 0 }
 0x69f   :  { %v830_v62 = vpack.c.bf16 %v822_v8, %v822_v8 }
 0x6b2   :  { %v797_v4 = vpop.xlane.xlu0 %796 }
 0x6b3   :  { %3801 = vrcp.f32 %v797_v4 }
 0x6b6   :  { %v803_v6 = vpop.xlane.xlu0 %802 }
 0x6b7   :  { %3803 = vrcp.f32 %v803_v6 }
 0x6ba   :  { %v1169_v9 = vpop.permute.xlu0 %1168 }
 0x6bb   :  { %v1174_v10 = vsel %vm836_vm8, %v1169_v9, 0 }
 0x6bc   :  { %3521 = vmatpush3.bf16.msra.mxu0 %v1174_v10 }
 0x6bd   :  { %v3802_v19 = vpop.eup %3801  ;;  %3532 = vmatprep.subr.bf16.mxu0 %v3924_v2 }
 0x6be   :  { %v819_v11 = vmul.f32 %v3802_v19, %v4196_v30  ;;  %v1272_v26 = vpop.permute.xlu0 %1271 }
 0x6bf   :  { %3523 = vmatmul.mubr.msk.bf16.vlgmr.msra.gmra.mrb[32].mxu0 %vm344_vm7, %v830_v62  ;;  %v1277_v27 = vsel %vm836_vm8, %v1272_v26, 0 }
 0x6c0   :  { %v827_v12 = vpack.c.bf16 %v819_v11, %v819_v11  ;;  %3534 = vmatprep.mubr.msk.bf16.mxu0 %vm3925_vm0, %v3924_v2  ;;  %3533 = vmatpush3.bf16.msra.mxu0 %v1277_v27 }
 0x6c1   :  { %v3804_v14 = vpop.eup %3803  ;;  %3544 = vmatprep.subr.bf16.mxu0 %v3924_v2 }
 0x6c2   :  { %3505 = vmatmul.mubr.msk.bf16.vlgmr.msra.gmra.mrb[28].mxu1 %vm344_vm7, %v827_v12  ;;  %v821_v18 = vmul.f32 %v3804_v14, %v4200_v33  ;;  %v1372_v42 = vpop.permute.xlu0 %1371 }
 0x6c3   :  { %3515 = vmatpush3.bf16.msra.mxu1 %v1126_v16  ;;  %3516 = vmatprep.mubr.msk.bf16.mxu1 %vm3925_vm0, %v3924_v2  ;;  %v1377_v48 = vsel %vm836_vm8, %v1372_v42, 0 }
 0x6c4   :  { %3526 = vmatprep.subr.bf16.mxu1 %v3924_v2  ;;  %v829_v23 = vpack.c.bf16 %v821_v18, %v821_v18 }
 0x6ca   :  { %3517 = vmatmul.mubr.msk.bf16.vlgmr.msra.gmra.mrb[32].mxu1 %vm344_vm7, %v829_v23 }
 0x6cb   :  { %3527 = vmatpush3.bf16.msra.mxu1 %v1227_v25  ;;  %3528 = vmatprep.mubr.msk.bf16.mxu1 %vm3925_vm0, %v3924_v2 }
 0x6cc   :  { %3538 = vmatprep.subr.bf16.mxu1 %v3924_v2 }
 0x707   :  { %v874_v28 = vpop.f32.mrb[20].mxu1 }
 0x708   :  { %v3482_v29 = vpop.f32.mrb[21].mxu1 }
 0x709   :  { %v877_v22 = vpop.f32.mrb[22].mxu1 }
 0x70a   :  { %v3483_v30 = vpop.f32.mrb[23].mxu1 }
 0x70b   :  { %v922_v13 = vpop.f32.mrb[20].mxu0 }
 0x70c   :  { %v1216_v32 = vpack.c.bf16 %v922_v13, %v874_v28  ;;  %v3488_v31 = vpop.f32.mrb[21].mxu0 }
 0x70d   :  { %v925_v33 = vpop.f32.mrb[22].mxu0  ;;  %v1437_v31 = vrot.slane %v4061_v63, %v4046_v54 }
 0x70e   :  { %v3489_v37 = vpop.f32.mrb[23].mxu0  ;;  %3529 = vmatmul.mubr.msk.bf16.vlgmr.msra.gmra.mrb[36].mxu1 %vm344_vm7, %v1216_v32 }
 0x70f   :  { %3540 = vmatprep.mubr.msk.bf16.mxu1 %vm3925_vm0, %v3924_v2  ;;  %3539 = vmatpush3.bf16.msra.mxu1 %v1327_v34 }
 0x710   :  { %3550 = vmatprep.subr.bf16.mxu1 %v3924_v2 }
 0x760   :  { %v970_v35 = vpop.f32.mrb[24].mxu1 }
 0x761   :  { %v3494_v36 = vpop.f32.mrb[25].mxu1 }
 0x762   :  { %v973_v40 = vpop.f32.mrb[26].mxu1 }
 0x763   :  { %v3495_v43 = vpop.f32.mrb[27].mxu1 }
 0x764   :  { %v1018_v44 = vpop.f32.mrb[24].mxu0 }
 0x765   :  { %v1217_v45 = vpack.c.bf16 %v1018_v44, %v970_v35  ;;  %v3500_v47 = vpop.f32.mrb[25].mxu0 }
 0x766   :  { %v1021_v50 = vpop.f32.mrb[26].mxu0 }
 0x767   :  { %v3501_v51 = vpop.f32.mrb[27].mxu0  ;;  %3535 = vmatmul.mubr.msk.bf16.vlgmr.msra.gmra.mrb[36].mxu0 %vm344_vm7, %v1217_v45 }
 0x768   :  { %3545 = vmatpush3.bf16.msra.mxu0 %v1377_v48  ;;  %3546 = vmatprep.mubr.msk.bf16.mxu0 %vm3925_vm0, %v3924_v2 }
 0x769   :  { %3558 = vmatprep.subr.bf16.mxu0 %v3924_v2 }
 0x76c   :  { %v1114_v52 = vpop.f32.mrb[28].mxu0 }
 0x76d   :  { %v3512_v55 = vpop.f32.mrb[29].mxu0 }
 0x76e   :  { %v1117_v56 = vpop.f32.mrb[30].mxu0 }
 0x76f   :  { %v3513_v57 = vpop.f32.mrb[31].mxu0 }
 0x792   :  { %v1210_v58 = vpop.f32.mrb[32].mxu0 }
 0x793   :  { %v3524_v15 = vpop.f32.mrb[33].mxu0 }
 0x794   :  { %v1213_v38 = vpop.f32.mrb[34].mxu0 }
 0x795   :  { %v1066_v20 = vpop.f32.mrb[28].mxu1  ;;  %v3525_v17 = vpop.f32.mrb[35].mxu0 }
 0x796   :  { %v1218_v53 = vpack.c.bf16 %v1114_v52, %v1066_v20  ;;  %v3506_v46 = vpop.f32.mrb[29].mxu1  ;;  %v3753_v20 = vld [vmem:[#allocation2 + $0x4] ss:$8 sps:$4 sm:$0xff]  }
 0x797   :  { %v1069_v59 = vpop.f32.mrb[30].mxu1  ;;  %v3755_v17 = vld [vmem:[#allocation2 + $0x24] ss:$8 sps:$4 sm:$0xff]  }
 0x798   :  { %v3507_v39 = vpop.f32.mrb[31].mxu1  ;;  %3541 = vmatmul.mubr.msk.bf16.vlgmr.msra.gmra.mrb[40].mxu1 %vm344_vm7, %v1218_v53  ;;  %v3756_v53 = vld [vmem:[#allocation2 + $0x34] ss:$8 sps:$4 sm:$0xff]  }
 0x799   :  { %3554 = vmatprep.mubr.msk.bf16.mxu1 %vm3925_vm0, %v3924_v2  ;;  %3551 = vmatpush3.bf16.msra.mxu1 %v3753_v20 }
 0x79a   :  { %3552 = vmatprep.subr.bf16.mxu1 %v3924_v2 }
 0x79d   :  { %v1162_v41 = vpop.f32.mrb[32].mxu1 }
 0x79e   :  { %v1219_v0 = vpack.c.bf16 %v1210_v58, %v1162_v41  ;;  %v3518_v1 = vpop.f32.mrb[33].mxu1 }
 0x79f   :  { %v1165_v4 = vpop.f32.mrb[34].mxu1 }
 0x7a0   :  { %v3519_v5 = vpop.f32.mrb[35].mxu1  ;;  %3547 = vmatmul.mubr.msk.bf16.vlgmr.msra.gmra.mrb[40].mxu0 %vm344_vm7, %v1219_v0  ;;  %v1470_v4 = vsub.s32 4, %v3986_v3 }
 0x7a1   :  { %3566 = vmatprep.mubr.msk.bf16.mxu0 %vm3925_vm0, %v3924_v2 }
 0x7a2   :  { %v1471_v5 = vrot.slane %v4061_v63, %v1470_v4 }
 0x7e1   :  { %v1263_v6 = vpop.f32.mrb[36].mxu1 }
 0x7e2   :  { %v3530_v8 = vpop.f32.mrb[37].mxu1  ;;  %v1420_v62 = vsel %vm159_vm6, %v1263_v6, 0.0  ;;  %v1476_v6 = vsub.s32 5, %v3986_v3 }
 0x7e3   :  { %v1266_v9 = vpop.f32.mrb[38].mxu1 }
 0x7e4   :  { %v3531_v10 = vpop.f32.mrb[39].mxu1  ;;  %v1427_v16 = vsel %vm159_vm6, %v1266_v9, 0.0 }
 0x83a   :  { %v1313_v19 = vpop.f32.mrb[36].mxu0 }
 0x83b   :  { %v1421_v11 = vsel %vm159_vm6, %v1313_v19, 0.0  ;;  %v3536_v7 = vpop.f32.mrb[37].mxu0 }
 0x83c   :  { %v1422_v12 = vadd.f32 %v1421_v11, %v1420_v62  ;;  %v1316_v14 = vpop.f32.mrb[38].mxu0  ;;  %v1477_v11 = vrot.slane %v4061_v63, %v1476_v6 }
 0x83d   :  { %v1428_v18 = vsel %vm159_vm6, %v1316_v14, 0.0  ;;  %v3537_v21 = vpop.f32.mrb[39].mxu0 }
 0x83e   :  { %v1429_v23 = vadd.f32 %v1428_v18, %v1427_v16 }
 0x86b   :  { %v1363_v25 = vpop.f32.mrb[40].mxu1 }
 0x86c   :  { %v1423_v26 = vsel %vm159_vm6, %v1363_v25, 0.0  ;;  %v3542_v27 = vpop.f32.mrb[41].mxu1 }
 0x86d   :  { %v1424_v28 = vadd.f32 %v1423_v26, %v1422_v12  ;;  %v1366_v29 = vpop.f32.mrb[42].mxu1  ;;  %v4316_v26 = vsub.s32 2, %v3986_v3 }
 0x86e   :  { %v1430_v22 = vsel %vm159_vm6, %v1366_v29, 0.0  ;;  %v3543_v30 = vpop.f32.mrb[43].mxu1 }
 0x86f   :  { %v1431_v13 = vadd.f32 %v1430_v22, %v1429_v23  ;;  %v1484_v27 = vrot.slane %v4061_v63, %v4316_v26 }
 0x873   :  { %v1413_v32 = vpop.f32.mrb[40].mxu0 }
 0x874   :  { %v1425_v33 = vsel %vm159_vm6, %v1413_v32, 0.0  ;;  %v3548_v37 = vpop.f32.mrb[41].mxu0 }
 0x875   :  { %v1426_v24 = vadd.f32 %v1425_v33, %v1424_v28  ;;  %v1416_v34 = vpop.f32.mrb[42].mxu0 }
 0x876   :  { %v1432_v35 = vsel %vm159_vm6, %v1416_v34, 0.0  ;;  %v3549_v36 = vpop.f32.mrb[43].mxu0 }
 0x877   :  { %v1438_v40 = vadd.f32 %v1437_v31, %v1426_v24  ;;  %v1433_v42 = vadd.f32 %v1432_v35, %v1431_v13 }
 0x879   :  { %v1439_v43 = vadd.f32 %v1437_v31, %v1433_v42  ;;  %v1440_v44 = vadd.f32 %v1438_v40, %v4049_v60 }
 0x87b   :  { %v1442_v45 = vsel %vm159_vm6, %v1440_v44, 0.0  ;;  %v1441_v47 = vadd.f32 %v1439_v43, %v4051_v61  ;;  %v3754_v61 = vld [vmem:[#allocation2 + $0x14] ss:$8 sps:$4 sm:$0xff]  }
 0x87c   :  { %1443 = vadd.xlane.f32.xlu1 %v1442_v45  ;;  %3553 = vmatpush3.bf16.msra.mxu1 %v3754_v61 }
 0x87d   :  { %v1445_v48 = vsel %vm159_vm6, %v1441_v47, 0.0  ;;  %3570 = vmatprep.subr.bf16.mxu1 %v3924_v2 }
 0x87e   :  { %1446 = vadd.xlane.f32.xlu0 %v1445_v48 }
 0x909   :  { %v1444_v50 = vpop.xlane.xlu1 %1443 }
 0x90a   :  { %v1448_v51 = vmul.f32 0.03125, %v1444_v50 }
 0x90b   :  { %v1447_v52 = vpop.xlane.xlu0 %1446 }
 0x90c   :  { %v1450_v55 = vsub.f32 %v1440_v44, %v1448_v51  ;;  %v1449_v56 = vmul.f32 0.03125, %v1447_v52 }
 0x90e   :  { %v1451_v57 = vsub.f32 %v1441_v47, %v1449_v56  ;;  %v1452_v58 = vmul.f32 %v1450_v55, %v1450_v55 }
 0x910   :  { %v1454_v15 = vsel %vm159_vm6, %v1452_v58, 0.0  ;;  %v1453_v38 = vmul.f32 %v1451_v57, %v1451_v57 }
 0x911   :  { %1455 = vadd.xlane.f32.xlu0 %v1454_v15 }
 0x912   :  { %v1457_v60 = vsel %vm159_vm6, %v1453_v38, 0.0 }
 0x913   :  { %1458 = vadd.xlane.f32.xlu1 %v1457_v60 }
 0x924   :  { %1576 = vrot.lane.b32.xlu1 %v3754_v61, %s3930_s26 }
 0x927   :  { %1574 = vrot.lane.b32.xlu0 %v3753_v20, %s3930_s26 }
 0x928   :  { %1578 = vrot.lane.b32.xlu1 %v3755_v17, %s3930_s26 }
 0x92b   :  { %1580 = vrot.lane.b32.xlu0 %v3756_v53, %s3930_s26 }
 0x99e   :  { %v1456_v46 = vpop.xlane.xlu0 %1455 }
 0x99f   :  { %v1460_v59 = vmul.f32 0.03125, %v1456_v46 }
 0x9a0   :  { %v1459_v39 = vpop.xlane.xlu1 %1458 }
 0x9a1   :  { %v1462_v41 = vadd.f32 1e-12, %v1460_v59  ;;  %v1461_v0 = vmul.f32 0.03125, %v1459_v39 }
 0x9a2   :  { %v1575_v18 = vpop.permute.xlu0 %1574 }
 0x9a3   :  { %3805 = vrsqrt.f32 %v1462_v41  ;;  %v1463_v1 = vadd.f32 1e-12, %v1461_v0  ;;  %3559 = vmatpush3.bf16.msra.mxu0 %v1575_v18 }
 0x9a4   :  { %v1577_v21 = vpop.permute.xlu1 %1576  ;;  %3560 = vmatprep.subr.bf16.mxu0 %v3924_v2 }
 0x9a5   :  { %3807 = vrsqrt.f32 %v1463_v1 }
 0x9a6   :  { %v1581_v25 = vpop.permute.xlu0 %1580 }
 0x9a7   :  { %3561 = vmatpush3.bf16.msra.mxu0 %v1577_v21 }
 0x9a8   :  { %v1579_v23 = vpop.permute.xlu1 %1578  ;;  %3562 = vmatprep.subr.bf16.mxu0 %v3924_v2 }
 0x9ab   :  { %3563 = vmatpush3.bf16.msra.mxu0 %v1579_v23 }
 0x9ac   :  { %3564 = vmatprep.subr.bf16.mxu0 %v3924_v2 }
 0x9ad   :  { %v3806_v8 = vpop.eup %3805 }
 0x9ae   :  { %v1466_v9 = vmul.f32 %v3806_v8, %v1450_v55 }
 0x9af   :  { %v3808_v10 = vpop.eup %3807  ;;  %3565 = vmatpush3.bf16.msra.mxu0 %v1581_v25 }
 0x9b0   :  { %v1472_v19 = vmul.f32 %v1471_v5, %v1466_v9  ;;  %v1467_v62 = vmul.f32 %v3808_v10, %v1451_v57  ;;  %3584 = vmatprep.subr.bf16.mxu0 %v3924_v2  ;;  %v1562_v57 = vsub.s32 3, %v3986_v3 }
 0x9b2   :  { %v1473_v7 = vmul.f32 %v1471_v5, %v1467_v62  ;;  %v1478_v12 = vadd.f32 %v1477_v11, %v1472_v19  ;;  %v1563_v58 = vrot.slane %v4061_v63, %v1562_v57 }
 0x9b4   :  { %v1479_v14 = vadd.f32 %v1477_v11, %v1473_v7  ;;  %v4331_v11 = vld [vmem:[#allocation2 + $0x40] sm:$0xf]  ;;  %v4333_v7 = vld [vmem:[#allocation2 + $0x48] sm:$0xf] }
 0x9b6   :  { %v1480_v16 = vpack.c.bf16 %v1479_v14, %v1478_v12 }
 0x9b8   :  { %3555 = vmatmul.mubr.msk.bf16.vlgmr.msra.gmra.mrb[44].mxu1 %vm159_vm6, %v1480_v16  ;;  %v4339_v16 = vld [vmem:[#allocation2 + $0x58] sm:$0xf] }
 0x9b9   :  { %3574 = vmatprep.mubr.msk.bf16.mxu1 %vm3925_vm0, %v3924_v2 }
 0xa8b   :  { %v1534_v28 = vpop.f32.mrb[44].mxu1 }
 0xa8c   :  { %v1535_v29 = vadd.f32 %v1534_v28, %v1484_v27  ;;  %v3556_v22 = vpop.f32.mrb[45].mxu1 }
 0xa8d   :  { %v1537_v30 = vpop.f32.mrb[46].mxu1  ;;  %v1661_v22 = vsub.s32 6, %v3986_v3 }
 0xa8e   :  { %v1543_v13 = vmul.f32 0.044715, %v1535_v29  ;;  %v1538_v32 = vadd.f32 %v1537_v30, %v1484_v27  ;;  %v3557_v31 = vpop.f32.mrb[47].mxu1  ;;  %v1541_v48 = vmul.f32 0.5, %v1535_v29  ;;  %v3869_v30 = vld [vmem:[%s4674_s4] sm:$0xff] }
 0xa90   :  { %v1545_v33 = vmul.f32 %v1543_v13, %v1535_v29  ;;  %v1544_v37 = vmul.f32 0.044715, %v1538_v32  ;;  %v1542_v50 = vmul.f32 0.5, %v1538_v32  ;;  %v1662_v13 = vrot.slane %v3869_v30, %v1661_v22 }
 0xa92   :  { %v1547_v24 = vmul.f32 %v1545_v33, %v1535_v29  ;;  %v1546_v34 = vmul.f32 %v1544_v37, %v1538_v32 }
 0xa94   :  { %v1549_v35 = vadd.f32 %v1547_v24, %v1535_v29  ;;  %v1548_v36 = vmul.f32 %v1546_v34, %v1538_v32 }
 0xa96   :  { %v1551_v40 = vmul.f32 0.7978846, %v1549_v35  ;;  %v1550_v42 = vadd.f32 %v1548_v36, %v1538_v32  ;;  %v1667_v32 = vsub.s32 7, %v3986_v3 }
 0xa98   :  { %3809 = vtanh.f32 %v1551_v40  ;;  %v1552_v43 = vmul.f32 0.7978846, %v1550_v42  ;;  %v1668_v35 = vrot.slane %v3869_v30, %v1667_v32 }
 0xa9a   :  { %3811 = vtanh.f32 %v1552_v43 }
 0xaa2   :  { %v3810_v44 = vpop.eup %3809 }
 0xaa3   :  { %v1555_v45 = vadd.f32 1.0, %v3810_v44  ;;  %v4366_v44 = vld [vmem:[%s4674_s4 + $0x8] sm:$0xff] }
 0xaa4   :  { %v3812_v47 = vpop.eup %3811 }
 0xaa5   :  { %v1556_v51 = vadd.f32 1.0, %v3812_v47  ;;  %v1557_v52 = vmul.f32 %v1555_v45, %v1541_v48  ;;  %v1690_v45 = vrot.slane %v4366_v44, %v4039_v49 }
 0xaa7   :  { %v1558_v55 = vmul.f32 %v1556_v51, %v1542_v50 }
 0xaa9   :  { %v1559_v56 = vpack.c.bf16 %v1558_v55, %v1557_v52 }
 0xaab   :  { %3567 = vmatmul.mubr.msk.bf16.vlgmr.msra.gmra.mrb[44].mxu0 %vm1586_vm9, %v1559_v56 }
 0xaac   :  { %3586 = vmatprep.mubr.msk.bf16.mxu0 %vm3925_vm0, %v3924_v2 }
 0xb7e   :  { %v1624_v15 = vpop.f32.mrb[44].mxu0 }
 0xb7f   :  { %v1625_v38 = vadd.f32 %v1624_v15, %v1563_v58  ;;  %v3568_v60 = vpop.f32.mrb[45].mxu0 }
 0xb80   :  { %v1627_v20 = vpop.f32.mrb[46].mxu0 }
 0xb81   :  { %v1628_v61 = vadd.f32 %v1627_v20, %v1563_v58  ;;  %v3569_v17 = vpop.f32.mrb[47].mxu0  ;;  %v1631_v53 = vadd.f32 %v1625_v38, %v1478_v12  ;;  %v3250_v12 = vcombine.low %v4331_v11, %v4333_v7 }
 0xb83   :  { %v1633_v46 = vsel %vm159_vm6, %v1631_v53, 0.0  ;;  %v1632_v59 = vadd.f32 %v1628_v61, %v1479_v14  ;;  %3571 = vmatpush3.bf16.msra.mxu1 %v3250_v12  ;;  %v4337_v14 = vld [vmem:[#allocation2 + $0x50] sm:$0xf] }
 0xb84   :  { %1634 = vadd.xlane.f32.xlu1 %v1633_v46  ;;  %3572 = vmatprep.subr.bf16.mxu1 %v3924_v2  ;;  %v3251_v18 = vcombine.low %v4337_v14, %v4339_v16 }
 0xb85   :  { %v1636_v39 = vsel %vm159_vm6, %v1632_v59, 0.0 }
 0xb86   :  { %1637 = vadd.xlane.f32.xlu0 %v1636_v39 }
 0xb87   :  { %3573 = vmatpush3.bf16.msra.mxu1 %v3251_v18 }
 0xb88   :  { %3578 = vmatprep.subr.bf16.mxu1 %v3924_v2 }
 0xc11   :  { %v1635_v41 = vpop.xlane.xlu1 %1634 }
 0xc12   :  { %v1639_v0 = vmul.f32 0.03125, %v1635_v41 }
 0xc13   :  { %v1638_v1 = vpop.xlane.xlu0 %1637 }
 0xc14   :  { %v1641_v5 = vsub.f32 %v1631_v53, %v1639_v0  ;;  %v1640_v8 = vmul.f32 0.03125, %v1638_v1 }
 0xc16   :  { %v1642_v63 = vsub.f32 %v1632_v59, %v1640_v8  ;;  %v1643_v9 = vmul.f32 %v1641_v5, %v1641_v5 }
 0xc18   :  { %v1645_v10 = vsel %vm159_vm6, %v1643_v9, 0.0  ;;  %v1644_v19 = vmul.f32 %v1642_v63, %v1642_v63 }
 0xc19   :  { %1646 = vadd.xlane.f32.xlu0 %v1645_v10 }
 0xc1a   :  { %v1648_v62 = vsel %vm159_vm6, %v1644_v19, 0.0 }
 0xc1b   :  { %1649 = vadd.xlane.f32.xlu1 %v1648_v62 }
 0xca6   :  { %v1647_v21 = vpop.xlane.xlu0 %1646 }
 0xca7   :  { %v1651_v23 = vmul.f32 0.03125, %v1647_v21 }
 0xca8   :  { %v1650_v25 = vpop.xlane.xlu1 %1649 }
 0xca9   :  { %v1653_v27 = vadd.f32 1e-12, %v1651_v23  ;;  %v1652_v28 = vmul.f32 0.03125, %v1650_v25 }
 0xcab   :  { %3813 = vrsqrt.f32 %v1653_v27  ;;  %v1654_v29 = vadd.f32 1e-12, %v1652_v28 }
 0xcad   :  { %3815 = vrsqrt.f32 %v1654_v29 }
 0xcb5   :  { %v3814_v31 = vpop.eup %3813 }
 0xcb6   :  { %v1657_v33 = vmul.f32 %v3814_v31, %v1641_v5 }
 0xcb7   :  { %v3816_v37 = vpop.eup %3815 }
 0xcb8   :  { %v1663_v24 = vmul.f32 %v1662_v13, %v1657_v33  ;;  %v1658_v34 = vmul.f32 %v3816_v37, %v1642_v63 }
 0xcba   :  { %v1664_v36 = vmul.f32 %v1662_v13, %v1658_v34  ;;  %v4354_v40 = vadd.f32 %v1668_v35, %v1663_v24 }
 0xcbc   :  { %v4356_v42 = vadd.f32 %v1668_v35, %v1664_v36 }
 0xcbe   :  { %v1671_v43 = vpack.c.bf16 %v4356_v42, %v4354_v40 }
 0xcc0   :  { %3575 = vmatmul.mubr.msk.bf16.vlgmr.msra.gmra.mrb[48].mxu1 %vm159_vm6, %v1671_v43 }
 0xcc1   :  { %3580 = vmatprep.mubr.msk.bf16.mxu1 %vm3925_vm0, %v3924_v2 }
 0xd93   :  { %v1740_v47 = vpop.f32.mrb[48].mxu1 }
 0xd94   :  { %v3576_v48 = vpop.f32.mrb[49].mxu1  ;;  %v1741_v51 = vadd.f32 %v1740_v47, %v1690_v45 }
 0xd95   :  { %v1743_v50 = vpop.f32.mrb[50].mxu1 }
 0xd96   :  { %v1744_v52 = vadd.f32 %v1743_v50, %v1690_v45  ;;  %v3577_v55 = vpop.f32.mrb[51].mxu1  ;;  %v3296_v58 = vpack.c.bf16 %v1741_v51, %v1741_v51 }
 0xd98   :  { %v1747_v56 = vpack.c.bf16 %v1744_v52, %v1741_v51  ;;  %v4374_v15 = vpack.c.bf16 %v1744_v52, %v1744_v52 }
 0xd9a   :  { %1751 = vrot.lane.b32.xlu1 %v1747_v56, %s3928_s24  ;;  %1749 = vrot.lane.b32.xlu0 %v1747_v56, %s3927_s23 }
 0xd9e   :  { %1753 = vrot.lane.b32.xlu1 %v1747_v56, %s3929_s25  ;;  %1771 = vrot.lane.b32.xlu0 %v3296_v58, %s3926_s22 }
 0xda2   :  { %1819 = vrot.lane.b32.xlu1 %v4374_v15, %s3926_s22 }
 0xe0c   :  { %v1752_v49 = vpop.permute.xlu1 %1751  ;;  %v1750_v38 = vpop.permute.xlu0 %1749 }
 0xe0d   :  { %v4378_v60 = vcombine.low %v1750_v38, %v1750_v38  ;;  %v4380_v20 = vcombine.high %v1750_v38, %v1750_v38  ;;  %v4386_v53 = vcombine.low %v1752_v49, %v1752_v49  ;;  %v4388_v46 = vcombine.high %v1752_v49, %v1752_v49 }
 0xe0f   :  { %1915 = vrot.lane.b32.xlu1 %v4380_v20, %s3926_s22  ;;  %1867 = vrot.lane.b32.xlu0 %v4378_v60, %s3926_s22 }
 0xe10   :  { %v1754_v61 = vpop.permute.xlu1 %1753  ;;  %v1772_v17 = vpop.permute.xlu0 %1771 }
 0xe11   :  { %v1777_v59 = vsel %vm344_vm7, %v1772_v17, 0  ;;  %v4396_v41 = vcombine.low %v1754_v61, %v1754_v61  ;;  %v4398_v0 = vcombine.high %v1754_v61, %v1754_v61 }
 0xe12   :  { %3579 = vmatpush3.bf16.xpose.msra.mxu1 %v1777_v59 }
 0xe13   :  { %2011 = vrot.lane.b32.xlu1 %v4388_v46, %s3926_s22  ;;  %1963 = vrot.lane.b32.xlu0 %v4386_v53, %s3926_s22 }
 0xe14   :  { %v1820_v39 = vpop.permute.xlu1 %1819  ;;  %3590 = vmatprep.subr.bf16.mxu1 %v3924_v2 }
 0xe15   :  { %v1825_v1 = vsel %vm344_vm7, %v1820_v39, 0 }
 0xe16   :  { %3585 = vmatpush3.bf16.xpose.msra.mxu0 %v1825_v1 }
 0xe17   :  { %2107 = vrot.lane.b32.xlu1 %v4398_v0, %s3926_s22  ;;  %2059 = vrot.lane.b32.xlu0 %v4396_v41, %s3926_s22 }
 0xe18   :  { %3596 = vmatprep.subr.bf16.mxu0 %v3924_v2 }
 0xe19   :  { %3581 = vmatmul.mubr.msk.bf16.vlgmr.msra.gmra.mrb[52].mxu1 %vm344_vm7, %v3296_v58 }
 0xe1a   :  { %3592 = vmatprep.mubr.msk.bf16.mxu1 %vm3925_vm0, %v3924_v2 }
 0xe1b   :  { %2259 = vrot.lane.b32.xlu1 %v3296_v58, %s3930_s26 }
 0xe1d   :  { %3587 = vmatmul.mubr.msk.bf16.vlgmr.msra.gmra.mrb[48].mxu0 %vm344_vm7, %v4374_v15 }
 0xe1e   :  { %3598 = vmatprep.mubr.msk.bf16.mxu0 %vm3925_vm0, %v3924_v2 }
 0xe81   :  { %v1916_v5 = vpop.permute.xlu1 %1915  ;;  %v1868_v8 = vpop.permute.xlu0 %1867 }
 0xe82   :  { %v1921_v63 = vsel %vm344_vm7, %v1916_v5, 0  ;;  %v1873_v9 = vsel %vm344_vm7, %v1868_v8, 0 }
 0xe83   :  { %3591 = vmatpush3.bf16.xpose.msra.mxu1 %v1873_v9  ;;  %3597 = vmatpush3.bf16.xpose.msra.mxu0 %v1921_v63 }
 0xe84   :  { %3602 = vmatprep.subr.bf16.mxu1 %v3924_v2  ;;  %3608 = vmatprep.subr.bf16.mxu0 %v3924_v2 }
 0xe85   :  { %v2012_v10 = vpop.permute.xlu1 %2011  ;;  %v1964_v19 = vpop.permute.xlu0 %1963 }
 0xe86   :  { %v2017_v62 = vsel %vm344_vm7, %v2012_v10, 0  ;;  %v1969_v12 = vsel %vm344_vm7, %v1964_v19, 0 }
 0xe89   :  { %v2108_v18 = vpop.permute.xlu1 %2107  ;;  %v2060_v21 = vpop.permute.xlu0 %2059 }
 0xe8a   :  { %3593 = vmatmul.mubr.msk.bf16.vlgmr.msra.gmra.mrb[56].mxu1 %vm344_vm7, %v4378_v60  ;;  %3599 = vmatmul.mubr.msk.bf16.vlgmr.msra.gmra.mrb[52].mxu0 %vm344_vm7, %v4380_v20  ;;  %v2113_v23 = vsel %vm344_vm7, %v2108_v18, 0  ;;  %v2065_v25 = vsel %vm344_vm7, %v2060_v21, 0 }
 0xe8b   :  { %3603 = vmatpush3.bf16.xpose.msra.mxu1 %v1969_v12  ;;  %3609 = vmatpush3.bf16.xpose.msra.mxu0 %v2017_v62 }
 0xe8c   :  { %3604 = vmatprep.mubr.msk.bf16.mxu1 %vm3925_vm0, %v3924_v2  ;;  %3610 = vmatprep.mubr.msk.bf16.mxu0 %vm3925_vm0, %v3924_v2 }
 0xe8d   :  { %3614 = vmatprep.subr.bf16.mxu1 %v3924_v2  ;;  %3620 = vmatprep.subr.bf16.mxu0 %v3924_v2  ;;  %v2260_v27 = vpop.permute.xlu1 %2259 }
 0xe8e   :  { %v2265_v28 = vsel %vm836_vm8, %v2260_v27, 0 }
 0xe92   :  { %3605 = vmatmul.mubr.msk.bf16.vlgmr.msra.gmra.mrb[60].mxu1 %vm344_vm7, %v4386_v53  ;;  %3611 = vmatmul.mubr.msk.bf16.vlgmr.msra.gmra.mrb[56].mxu0 %vm344_vm7, %v4388_v46 }
 0xe93   :  { %3615 = vmatpush3.bf16.xpose.msra.mxu1 %v2065_v25  ;;  %3621 = vmatpush3.bf16.xpose.msra.mxu0 %v2113_v23 }
 0xe94   :  { %3616 = vmatprep.mubr.msk.bf16.mxu1 %vm3925_vm0, %v3924_v2  ;;  %3622 = vmatprep.mubr.msk.bf16.mxu0 %vm3925_vm0, %v3924_v2 }
 0xe95   :  { %3626 = vmatprep.subr.bf16.mxu1 %v3924_v2  ;;  %3632 = vmatprep.subr.bf16.mxu0 %v3924_v2 }
 0xe9a   :  { %3617 = vmatmul.mubr.msk.bf16.vlgmr.msra.gmra.mrb[64].mxu1 %vm344_vm7, %v4396_v41  ;;  %3623 = vmatmul.mubr.msk.bf16.vlgmr.msra.gmra.mrb[60].mxu0 %vm344_vm7, %v4398_v0 }
 0xe9b   :  { %3627 = vmatpush3.bf16.msra.mxu1 %v2265_v28  ;;  %3634 = vmatprep.mubr.msk.bf16.mxu0 %vm3925_vm0, %v3924_v2 }
 0xe9c   :  { %3628 = vmatprep.mubr.msk.bf16.mxu1 %vm3925_vm0, %v3924_v2  ;;  %3638 = vmatprep.subr.bf16.mxu1 %v3924_v2 }
 0xeec   :  { %v1813_v29 = vpop.f32.mrb[52].mxu1 }
 0xeed   :  { %v4452_v30 = vmul.f32 0.35355338, %v1813_v29  ;;  %v3582_v13 = vpop.f32.mrb[53].mxu1 }
 0xeee   :  { %v1816_v31 = vpop.f32.mrb[54].mxu1 }
 0xeef   :  { %v3583_v33 = vpop.f32.mrb[55].mxu1  ;;  %v2163_v37 = vsel %vm344_vm7, %v4452_v30, -inf }
 0xef0   :  { %2164 = vmax.xlane.f32.xlu0 %v2163_v37  ;;  %v1861_v24 = vpop.f32.mrb[48].mxu0 }
 0xef1   :  { %v2156_v34 = vmul.f32 0.35355338, %v1861_v24  ;;  %v3588_v35 = vpop.f32.mrb[49].mxu0 }
 0xef2   :  { %v1864_v36 = vpop.f32.mrb[50].mxu0 }
 0xef3   :  { %v3589_v43 = vpop.f32.mrb[51].mxu0  ;;  %v2166_v45 = vsel %vm344_vm7, %v2156_v34, -inf }
 0xef4   :  { %2167 = vmax.xlane.f32.xlu1 %v2166_v45 }
 0xf5d   :  { %v1909_v47 = vpop.f32.mrb[56].mxu1  ;;  %v1957_v48 = vpop.f32.mrb[52].mxu0 }
 0xf5e   :  { %v2157_v50 = vmul.f32 0.35355338, %v1909_v47  ;;  %v3594_v51 = vpop.f32.mrb[57].mxu1  ;;  %v3600_v52 = vpop.f32.mrb[53].mxu0  ;;  %v2158_v58 = vmul.f32 0.35355338, %v1957_v48 }
 0xf5f   :  { %v1912_v55 = vpop.f32.mrb[58].mxu1  ;;  %v1960_v56 = vpop.f32.mrb[54].mxu0 }
 0xf60   :  { %v3595_v49 = vpop.f32.mrb[59].mxu1  ;;  %v3601_v38 = vpop.f32.mrb[55].mxu0  ;;  %v2169_v61 = vsel %vm344_vm7, %v2157_v50, -inf  ;;  %v2172_v17 = vsel %vm344_vm7, %v2158_v58, -inf }
 0xf61   :  { %2170 = vmax.xlane.f32.xlu0 %v2169_v61 }
 0xf65   :  { %v2005_v59 = vpop.f32.mrb[60].mxu1  ;;  %2173 = vmax.xlane.f32.xlu0 %v2172_v17  ;;  %v2053_v39 = vpop.f32.mrb[56].mxu0 }
 0xf66   :  { %v4459_v1 = vmul.f32 0.35355338, %v2005_v59  ;;  %v4461_v5 = vmul.f32 0.35355338, %v2053_v39  ;;  %v3606_v8 = vpop.f32.mrb[61].mxu1  ;;  %v3612_v63 = vpop.f32.mrb[57].mxu0 }
 0xf67   :  { %v2008_v9 = vpop.f32.mrb[62].mxu1  ;;  %v2056_v10 = vpop.f32.mrb[58].mxu0 }
 0xf68   :  { %v3607_v19 = vpop.f32.mrb[63].mxu1  ;;  %v3613_v62 = vpop.f32.mrb[59].mxu0  ;;  %v2175_v12 = vsel %vm344_vm7, %v4459_v1, -inf  ;;  %v2178_v18 = vsel %vm344_vm7, %v4461_v5, -inf }
 0xf69   :  { %2176 = vmax.xlane.f32.xlu1 %v2175_v12  ;;  %2179 = vmax.xlane.f32.xlu0 %v2178_v18 }
 0xf6d   :  { %v2101_v21 = vpop.f32.mrb[64].mxu1  ;;  %v2149_v23 = vpop.f32.mrb[60].mxu0 }
 0xf6e   :  { %v2161_v25 = vmul.f32 0.35355338, %v2101_v21  ;;  %v2162_v27 = vmul.f32 0.35355338, %v2149_v23  ;;  %v3618_v28 = vpop.f32.mrb[65].mxu1  ;;  %v3624_v29 = vpop.f32.mrb[61].mxu0 }
 0xf6f   :  { %v2104_v13 = vpop.f32.mrb[66].mxu1  ;;  %v2152_v31 = vpop.f32.mrb[62].mxu0 }
 0xf70   :  { %v3619_v33 = vpop.f32.mrb[67].mxu1  ;;  %v3625_v37 = vpop.f32.mrb[63].mxu0  ;;  %v2181_v24 = vsel %vm344_vm7, %v2161_v25, -inf  ;;  %v2184_v35 = vsel %vm344_vm7, %v2162_v27, -inf }
 0xf71   :  { %2182 = vmax.xlane.f32.xlu1 %v2181_v24  ;;  %2185 = vmax.xlane.f32.xlu0 %v2184_v35 }
 0xf7d   :  { %v2165_v45 = vpop.xlane.xlu0 %2164 }
 0xf7e   :  { %v2187_v47 = vsub.f32 %v4452_v30, %v2165_v45 }
 0xf80   :  { %v2195_v51 = vmul.f32 1.442695, %v2187_v47 }
 0xf81   :  { %v2168_v36 = vpop.xlane.xlu1 %2167 }
 0xf82   :  { %2355 = vrot.lane.b32.xlu1 %v4378_v60, %s3930_s26  ;;  %v2188_v43 = vsub.f32 %v2156_v34, %v2168_v36 }
 0xf84   :  { %v2197_v48 = vmul.f32 1.442695, %v2188_v43 }
 0xf86   :  { %2403 = vrot.lane.b32.xlu1 %v4380_v20, %s3930_s26  ;;  %3817 = vpow2.f32 %v2197_v48 }
 0xf87   :  { %2307 = vrot.lane.b32.xlu0 %v4374_v15, %s3930_s26  ;;  %3819 = vpow2.f32 %v2195_v51 }
 0xf90   :  { %v3818_v52 = vpop.eup %3817 }
 0xf91   :  { %v2214_v55 = vsel %vm344_vm7, %v3818_v52, 0.0  ;;  %v4477_v56 = vpop.eup %3819 }
 0xf92   :  { %v2211_v60 = vsel %vm344_vm7, %v4477_v56, 0.0 }
 0xfa6   :  { %2215 = vadd.xlane.f32.xlu0 %v2214_v55 }
 0xfaa   :  { %2212 = vadd.xlane.f32.xlu1 %v2211_v60 }
 0xfee   :  { %v2171_v15 = vpop.xlane.xlu0 %2170 }
 0xfef   :  { %v2189_v20 = vsub.f32 %v2157_v50, %v2171_v15 }
 0xff1   :  { %v2199_v34 = vmul.f32 1.442695, %v2189_v20 }
 0xff2   :  { %v2174_v49 = vpop.xlane.xlu0 %2173 }
 0xff3   :  { %3821 = vpow2.f32 %v2199_v34  ;;  %v2190_v30 = vsub.f32 %v2158_v58, %v2174_v49 }
 0xff5   :  { %v2201_v38 = vmul.f32 1.442695, %v2190_v30 }
 0xff6   :  { %v2180_v61 = vpop.xlane.xlu0 %2179  ;;  %v2177_v58 = vpop.xlane.xlu1 %2176 }
 0xff7   :  { %3823 = vpow2.f32 %v2201_v38  ;;  %v2191_v10 = vsub.f32 %v4459_v1, %v2177_v58  ;;  %v2192_v62 = vsub.f32 %v4461_v5, %v2180_v61 }
 0xff9   :  { %v2203_v12 = vmul.f32 1.442695, %v2191_v10  ;;  %v2205_v21 = vmul.f32 1.442695, %v2192_v62 }
 0xffb   :  { %3825 = vpow2.f32 %v2203_v12 }
 0xffc   :  { %3827 = vpow2.f32 %v2205_v21 }
 0xffd   :  { %v4481_v17 = vpop.eup %3821 }
 0xffe   :  { %v2186_v59 = vpop.xlane.xlu0 %2185  ;;  %v2217_v39 = vsel %vm344_vm7, %v4481_v17, 0.0  ;;  %v2183_v19 = vpop.xlane.xlu1 %2182 }
 0xfff   :  { %2218 = vadd.xlane.f32.xlu1 %v2217_v39  ;;  %v2193_v18 = vsub.f32 %v2161_v25, %v2183_v19  ;;  %v2194_v28 = vsub.f32 %v2162_v27, %v2186_v59 }
0x1001   :  { %v4485_v8 = vpop.eup %3823  ;;  %v2207_v23 = vmul.f32 1.442695, %v2193_v18  ;;  %v2209_v29 = vmul.f32 1.442695, %v2194_v28 }
0x1002   :  { %v2308_v63 = vpop.permute.xlu0 %2307  ;;  %v2220_v50 = vsel %vm344_vm7, %v4485_v8, 0.0  ;;  %v2356_v13 = vpop.permute.xlu1 %2355 }
0x1003   :  { %v2313_v9 = vsel %vm836_vm8, %v2308_v63, 0  ;;  %2221 = vadd.xlane.f32.xlu0 %v2220_v50  ;;  %3829 = vpow2.f32 %v2207_v23  ;;  %v2361_v60 = vsel %vm836_vm8, %v2356_v13, 0 }
0x1004   :  { %3633 = vmatpush3.bf16.msra.mxu0 %v2313_v9  ;;  %3831 = vpow2.f32 %v2209_v29 }
0x1005   :  { %3644 = vmatprep.subr.bf16.mxu0 %v3924_v2 }
0x1006   :  { %v2404_v31 = vpop.permute.xlu1 %2403 }
0x1007   :  { %v2409_v48 = vsel %vm836_vm8, %v2404_v31, 0 }
0x1010   :  { %2499 = vrot.lane.b32.xlu1 %v4388_v46, %s3930_s26  ;;  %v4497_v46 = vpop.eup %3825 }
0x1011   :  { %v2223_v5 = vsel %vm344_vm7, %v4497_v46, 0.0 }
0x1019   :  { %2451 = vrot.lane.b32.xlu0 %v4386_v53, %s3930_s26  ;;  %v4499_v53 = vpop.eup %3827 }
0x101a   :  { %v4503_v33 = vpop.eup %3829  ;;  %v2226_v37 = vsel %vm344_vm7, %v4499_v53, 0.0 }
0x101b   :  { %v2229_v27 = vsel %vm344_vm7, %v4503_v33, 0.0  ;;  %v4509_v24 = vpop.eup %3831 }
0x101c   :  { %v2232_v35 = vsel %vm344_vm7, %v4509_v24, 0.0 }
0x1033   :  { %v2216_v1 = vpop.xlane.xlu0 %2215 }
0x1034   :  { %3833 = vrcp.f32 %v2216_v1  ;;  %2224 = vadd.xlane.f32.xlu1 %v2223_v5 }
0x1037   :  { %v2213_v25 = vpop.xlane.xlu1 %2212 }
0x1038   :  { %3835 = vrcp.f32 %v2213_v25  ;;  %2230 = vadd.xlane.f32.xlu1 %v2229_v27  ;;  %2227 = vadd.xlane.f32.xlu0 %v2226_v37 }
0x103c   :  { %2233 = vadd.xlane.f32.xlu0 %v2232_v35 }
0x103e   :  { %v3834_v36 = vpop.eup %3833 }
0x103f   :  { %v2244_v43 = vmul.f32 %v3834_v36, %v3818_v52  ;;  %v3277_v52 = vcombine.low %v4331_v11, %v4331_v11 }
0x1041   :  { %v2252_v45 = vpack.c.bf16 %v2244_v43, %v2244_v43 }
0x1042   :  { %v3836_v47 = vpop.eup %3835 }
0x1043   :  { %v2243_v51 = vmul.f32 %v3836_v47, %v4477_v56  ;;  %3635 = vmatmul.mubr.msk.bf16.vlgmr.msra.gmra.mrb[64].mxu0 %vm344_vm7, %v2252_v45  ;;  %v3279_v56 = vcombine.low %v4333_v7, %v4333_v7  ;;  %v3281_v7 = vcombine.low %v4337_v14, %v4337_v14 }
0x1044   :  { %3645 = vmatpush3.bf16.msra.mxu0 %v2409_v48  ;;  %3646 = vmatprep.mubr.msk.bf16.mxu0 %vm3925_vm0, %v3924_v2 }
0x1045   :  { %v2251_v55 = vpack.c.bf16 %v2243_v51, %v2243_v51  ;;  %3656 = vmatprep.subr.bf16.mxu0 %v3924_v2 }
0x1047   :  { %3629 = vmatmul.mubr.msk.bf16.vlgmr.msra.gmra.mrb[68].mxu1 %vm344_vm7, %v2251_v55 }
0x1048   :  { %3639 = vmatpush3.bf16.msra.mxu1 %v2361_v60  ;;  %3640 = vmatprep.mubr.msk.bf16.mxu1 %vm3925_vm0, %v3924_v2 }
0x1049   :  { %2595 = vrot.lane.b32.xlu1 %v4398_v0, %s3930_s26  ;;  %3650 = vmatprep.subr.bf16.mxu1 %v3924_v2 }
0x104d   :  { %2698 = vrot.lane.b32.xlu1 %v3279_v56, %s3931_s27 }
0x1052   :  { %2547 = vrot.lane.b32.xlu0 %v4396_v41, %s3930_s26 }
0x1056   :  { %2648 = vrot.lane.b32.xlu0 %v3277_v52, %s3931_s27 }
0x105a   :  { %2748 = vrot.lane.b32.xlu0 %v3281_v7, %s3931_s27 }
0x108c   :  { %v2219_v15 = vpop.xlane.xlu1 %2218 }
0x108d   :  { %3837 = vrcp.f32 %v2219_v15 }
0x1090   :  { %v2222_v20 = vpop.xlane.xlu0 %2221  ;;  %v2500_v61 = vpop.permute.xlu1 %2499 }
0x1091   :  { %3839 = vrcp.f32 %v2222_v20  ;;  %v2505_v39 = vsel %vm836_vm8, %v2500_v61, 0 }
0x1094   :  { %v2452_v49 = vpop.permute.xlu0 %2451 }
0x1095   :  { %v2457_v11 = vsel %vm836_vm8, %v2452_v49, 0 }
0x1097   :  { %v3838_v0 = vpop.eup %3837 }
0x1098   :  { %v2245_v34 = vmul.f32 %v3838_v0, %v4481_v17  ;;  %v3283_v17 = vcombine.low %v4339_v16, %v4339_v16 }
0x109a   :  { %v2253_v30 = vpack.c.bf16 %v2245_v34, %v2245_v34  ;;  %2798 = vrot.lane.b32.xlu1 %v3283_v17, %s3931_s27 }
0x109b   :  { %v3840_v41 = vpop.eup %3839 }
0x109c   :  { %v2246_v38 = vmul.f32 %v3840_v41, %v4485_v8  ;;  %3641 = vmatmul.mubr.msk.bf16.vlgmr.msra.gmra.mrb[72].mxu1 %vm344_vm7, %v2253_v30 }
0x109d   :  { %3651 = vmatpush3.bf16.msra.mxu1 %v2457_v11  ;;  %3652 = vmatprep.mubr.msk.bf16.mxu1 %vm3925_vm0, %v3924_v2 }
0x109e   :  { %v2254_v59 = vpack.c.bf16 %v2246_v38, %v2246_v38  ;;  %3662 = vmatprep.subr.bf16.mxu1 %v3924_v2 }
0x10a0   :  { %3647 = vmatmul.mubr.msk.bf16.vlgmr.msra.gmra.mrb[68].mxu0 %vm344_vm7, %v2254_v59 }
0x10a1   :  { %3657 = vmatpush3.bf16.msra.mxu0 %v2505_v39  ;;  %3658 = vmatprep.mubr.msk.bf16.mxu0 %vm3925_vm0, %v3924_v2 }
0x10a2   :  { %3668 = vmatprep.subr.bf16.mxu0 %v3924_v2 }
0x10c1   :  { %v2225_v14 = vpop.xlane.xlu1 %2224 }
0x10c2   :  { %3841 = vrcp.f32 %v2225_v14 }
0x10c5   :  { %v2231_v16 = vpop.xlane.xlu1 %2230  ;;  %v2228_v8 = vpop.xlane.xlu0 %2227 }
0x10c6   :  { %3843 = vrcp.f32 %v2231_v16 }
0x10c7   :  { %3845 = vrcp.f32 %v2228_v8 }
0x10c9   :  { %v2234_v63 = vpop.xlane.xlu0 %2233  ;;  %v2596_v23 = vpop.permute.xlu1 %2595 }
0x10ca   :  { %3847 = vrcp.f32 %v2234_v63 }
0x10cc   :  { %v3842_v50 = vpop.eup %3841 }
0x10cd   :  { %v2247_v9 = vmul.f32 %v3842_v50, %v4497_v46  ;;  %v2548_v58 = vpop.permute.xlu0 %2547  ;;  %v2601_v46 = vsel %vm836_vm8, %v2596_v23, 0 }
0x10ce   :  { %v2553_v12 = vsel %vm836_vm8, %v2548_v58, 0 }
0x10cf   :  { %v2255_v10 = vpack.c.bf16 %v2247_v9, %v2247_v9 }
0x10d0   :  { %v3844_v19 = vpop.eup %3843 }
0x10d1   :  { %v3846_v62 = vpop.eup %3845  ;;  %3653 = vmatmul.mubr.msk.bf16.vlgmr.msra.gmra.mrb[76].mxu1 %vm344_vm7, %v2255_v10  ;;  %v2249_v21 = vmul.f32 %v3844_v19, %v4503_v33  ;;  %v2649_v29 = vpop.permute.xlu0 %2648 }
0x10d2   :  { %v2248_v18 = vmul.f32 %v3846_v62, %v4499_v53  ;;  %3663 = vmatpush3.bf16.msra.mxu1 %v2553_v12  ;;  %3664 = vmatprep.mubr.msk.bf16.mxu1 %vm3925_vm0, %v3924_v2  ;;  %v2654_v53 = vsel %vm836_vm8, %v2649_v29, 0  ;;  %v2699_v33 = vpop.permute.xlu1 %2698 }
0x10d3   :  { %3674 = vmatprep.subr.bf16.mxu1 %v3924_v2  ;;  %v2257_v31 = vpack.c.bf16 %v2249_v21, %v2249_v21  ;;  %v2704_v25 = vsel %vm836_vm8, %v2699_v33, 0 }
0x10d4   :  { %v2256_v28 = vpack.c.bf16 %v2248_v18, %v2248_v18  ;;  %v3848_v13 = vpop.eup %3847 }
0x10d5   :  { %v2250_v1 = vmul.f32 %v3848_v13, %v4509_v24  ;;  %v2749_v51 = vpop.permute.xlu0 %2748 }
0x10d6   :  { %3659 = vmatmul.mubr.msk.bf16.vlgmr.msra.gmra.mrb[72].mxu0 %vm344_vm7, %v2256_v28  ;;  %v2754_v55 = vsel %vm836_vm8, %v2749_v51, 0 }
0x10d7   :  { %3669 = vmatpush3.bf16.msra.mxu0 %v2601_v46  ;;  %3670 = vmatprep.mubr.msk.bf16.mxu0 %vm3925_vm0, %v3924_v2  ;;  %v2258_v5 = vpack.c.bf16 %v2250_v1, %v2250_v1 }
0x10d8   :  { %3680 = vmatprep.subr.bf16.mxu0 %v3924_v2 }
0x10d9   :  { %3665 = vmatmul.mubr.msk.bf16.vlgmr.msra.gmra.mrb[80].mxu1 %vm344_vm7, %v2257_v31 }
0x10da   :  { %3675 = vmatpush3.bf16.msra.mxu1 %v2654_v53  ;;  %3676 = vmatprep.mubr.msk.bf16.mxu1 %vm3925_vm0, %v3924_v2 }
0x10db   :  { %3686 = vmatprep.subr.bf16.mxu1 %v3924_v2 }
0x10de   :  { %3671 = vmatmul.mubr.msk.bf16.vlgmr.msra.gmra.mrb[76].mxu0 %vm344_vm7, %v2258_v5 }
0x10df   :  { %3682 = vmatprep.mubr.msk.bf16.mxu0 %vm3925_vm0, %v3924_v2  ;;  %3681 = vmatpush3.bf16.msra.mxu0 %v2704_v25 }
0x10e0   :  { %3692 = vmatprep.subr.bf16.mxu0 %v3924_v2 }
0x110c   :  { %v2799_v15 = vpop.permute.xlu1 %2798 }
0x110d   :  { %v2804_v30 = vsel %vm836_vm8, %v2799_v15, 0 }
0x1116   :  { %v2349_v27 = vpop.f32.mrb[64].mxu0 }
0x1117   :  { %v3636_v37 = vpop.f32.mrb[65].mxu0 }
0x1118   :  { %v2352_v24 = vpop.f32.mrb[66].mxu0 }
0x1119   :  { %v3637_v35 = vpop.f32.mrb[67].mxu0 }
0x111a   :  { %v2301_v36 = vpop.f32.mrb[68].mxu1 }
0x111b   :  { %v2643_v43 = vpack.c.bf16 %v2349_v27, %v2301_v36  ;;  %v3630_v45 = vpop.f32.mrb[69].mxu1 }
0x111c   :  { %v2304_v47 = vpop.f32.mrb[70].mxu1 }
0x111d   :  { %v3631_v48 = vpop.f32.mrb[71].mxu1  ;;  %3677 = vmatmul.mubr.msk.bf16.vlgmr.msra.gmra.mrb[84].mxu1 %vm344_vm7, %v2643_v43 }
0x111e   :  { %3688 = vmatprep.mubr.msk.bf16.mxu1 %vm3925_vm0, %v3924_v2  ;;  %3687 = vmatpush3.bf16.msra.mxu1 %v2754_v55 }
0x111f   :  { %3698 = vmatprep.subr.bf16.mxu1 %v3924_v2 }
0x116f   :  { %v2397_v60 = vpop.f32.mrb[72].mxu1 }
0x1170   :  { %v3642_v52 = vpop.f32.mrb[73].mxu1 }
0x1171   :  { %v2400_v56 = vpop.f32.mrb[74].mxu1 }
0x1172   :  { %v3643_v20 = vpop.f32.mrb[75].mxu1 }
0x1173   :  { %v2445_v0 = vpop.f32.mrb[68].mxu0 }
0x1174   :  { %v2644_v34 = vpack.c.bf16 %v2445_v0, %v2397_v60  ;;  %v3648_v49 = vpop.f32.mrb[69].mxu0  ;;  %v2864_v60 = vrot.slane %v4366_v44, %v4046_v54 }
0x1175   :  { %v2448_v41 = vpop.f32.mrb[70].mxu0 }
0x1176   :  { %v3649_v38 = vpop.f32.mrb[71].mxu0  ;;  %3683 = vmatmul.mubr.msk.bf16.vlgmr.msra.gmra.mrb[80].mxu0 %vm344_vm7, %v2644_v34 }
0x1177   :  { %3693 = vmatpush3.bf16.msra.mxu0 %v2804_v30  ;;  %3694 = vmatprep.mubr.msk.bf16.mxu0 %vm3925_vm0, %v3924_v2 }
0x1178   :  { %3706 = vmatprep.subr.bf16.mxu0 %v3924_v2 }
0x11a4   :  { %v2493_v11 = vpop.f32.mrb[76].mxu1 }
0x11a5   :  { %v3654_v61 = vpop.f32.mrb[77].mxu1 }
0x11a6   :  { %v2496_v7 = vpop.f32.mrb[78].mxu1 }
0x11a7   :  { %v3655_v17 = vpop.f32.mrb[79].mxu1 }
0x11a9   :  { %v2541_v59 = vpop.f32.mrb[72].mxu0 }
0x11aa   :  { %v2645_v39 = vpack.c.bf16 %v2541_v59, %v2493_v11  ;;  %v3660_v14 = vpop.f32.mrb[73].mxu0 }
0x11ab   :  { %v2544_v16 = vpop.f32.mrb[74].mxu0 }
0x11ac   :  { %v3661_v8 = vpop.f32.mrb[75].mxu0  ;;  %3689 = vmatmul.mubr.msk.bf16.vlgmr.msra.gmra.mrb[88].mxu1 %vm344_vm7, %v2645_v39  ;;  %v2589_v63 = vpop.f32.mrb[80].mxu1 }
0x11ad   :  { %v3666_v50 = vpop.f32.mrb[81].mxu1  ;;  %3702 = vmatprep.mubr.msk.bf16.mxu1 %vm3925_vm0, %v3924_v2 }
0x11ae   :  { %v2592_v9 = vpop.f32.mrb[82].mxu1 }
0x11af   :  { %v3667_v58 = vpop.f32.mrb[83].mxu1  ;;  %v3763_v9 = vld [vmem:[#allocation2 + $0x44] ss:$8 sps:$4 sm:$0xff]  }
0x11b0   :  { %3699 = vmatpush3.bf16.msra.mxu1 %v3763_v9  ;;  %v3765_v58 = vld [vmem:[#allocation2 + $0x64] ss:$8 sps:$4 sm:$0xff]  }
0x11b1   :  { %v2637_v10 = vpop.f32.mrb[76].mxu0  ;;  %3700 = vmatprep.subr.bf16.mxu1 %v3924_v2 }
0x11b2   :  { %v2646_v19 = vpack.c.bf16 %v2637_v10, %v2589_v63  ;;  %v3672_v62 = vpop.f32.mrb[77].mxu0  ;;  %v3766_v10 = vld [vmem:[#allocation2 + $0x74] ss:$8 sps:$4 sm:$0xff]  }
0x11b3   :  { %v2640_v12 = vpop.f32.mrb[78].mxu0 }
0x11b4   :  { %v3673_v18 = vpop.f32.mrb[79].mxu0  ;;  %3695 = vmatmul.mubr.msk.bf16.vlgmr.msra.gmra.mrb[84].mxu0 %vm344_vm7, %v2646_v19 }
0x11b5   :  { %3714 = vmatprep.mubr.msk.bf16.mxu0 %vm3925_vm0, %v3924_v2 }
0x11f0   :  { %v2690_v21 = vpop.f32.mrb[84].mxu1 }
0x11f1   :  { %v3678_v23 = vpop.f32.mrb[85].mxu1  ;;  %v2847_v46 = vsel %vm159_vm6, %v2690_v21, 0.0 }
0x11f2   :  { %v2693_v28 = vpop.f32.mrb[86].mxu1 }
0x11f3   :  { %v3679_v29 = vpop.f32.mrb[87].mxu1  ;;  %v2854_v33 = vsel %vm159_vm6, %v2693_v28, 0.0 }
0x11f4   :  { %v2898_v29 = vrot.slane %v4366_v44, %v1470_v4 }
0x1249   :  { %v2740_v13 = vpop.f32.mrb[80].mxu0 }
0x124a   :  { %v2848_v31 = vsel %vm159_vm6, %v2740_v13, 0.0  ;;  %v3684_v53 = vpop.f32.mrb[81].mxu0 }
0x124b   :  { %v2849_v1 = vadd.f32 %v2848_v31, %v2847_v46  ;;  %v2743_v5 = vpop.f32.mrb[82].mxu0 }
0x124c   :  { %v2855_v25 = vsel %vm159_vm6, %v2743_v5, 0.0  ;;  %v3685_v27 = vpop.f32.mrb[83].mxu0 }
0x124d   :  { %v2856_v37 = vadd.f32 %v2855_v25, %v2854_v33 }
0x127f   :  { %v2790_v24 = vpop.f32.mrb[88].mxu1 }
0x1280   :  { %v2850_v35 = vsel %vm159_vm6, %v2790_v24, 0.0  ;;  %v3690_v36 = vpop.f32.mrb[89].mxu1 }
0x1281   :  { %v2851_v43 = vadd.f32 %v2850_v35, %v2849_v1  ;;  %v2793_v45 = vpop.f32.mrb[90].mxu1  ;;  %v2904_v1 = vrot.slane %v4366_v44, %v1476_v6  ;;  %v2911_v35 = vrot.slane %v4366_v44, %v4316_v26 }
0x1282   :  { %v2857_v47 = vsel %vm159_vm6, %v2793_v45, 0.0  ;;  %v3691_v48 = vpop.f32.mrb[91].mxu1 }
0x1283   :  { %v2858_v51 = vadd.f32 %v2857_v47, %v2856_v37 }
0x1287   :  { %v2840_v55 = vpop.f32.mrb[84].mxu0 }
0x1288   :  { %v2852_v52 = vsel %vm159_vm6, %v2840_v55, 0.0  ;;  %v3696_v56 = vpop.f32.mrb[85].mxu0 }
0x1289   :  { %v2853_v15 = vadd.f32 %v2852_v52, %v2851_v43  ;;  %v2843_v20 = vpop.f32.mrb[86].mxu0 }
0x128a   :  { %v2859_v0 = vsel %vm159_vm6, %v2843_v20, 0.0  ;;  %v3697_v34 = vpop.f32.mrb[87].mxu0 }
0x128b   :  { %v2865_v49 = vadd.f32 %v2864_v60, %v2853_v15  ;;  %v2860_v30 = vadd.f32 %v2859_v0, %v2858_v51 }
0x128d   :  { %v2866_v41 = vadd.f32 %v2864_v60, %v2860_v30  ;;  %v2867_v38 = vadd.f32 %v2865_v49, %v4354_v40 }
0x128f   :  { %v2869_v11 = vsel %vm159_vm6, %v2867_v38, 0.0  ;;  %v2868_v61 = vadd.f32 %v2866_v41, %v4356_v42  ;;  %v3764_v42 = vld [vmem:[#allocation2 + $0x54] ss:$8 sps:$4 sm:$0xff]  }
0x1290   :  { %2870 = vadd.xlane.f32.xlu0 %v2869_v11  ;;  %3701 = vmatpush3.bf16.msra.mxu1 %v3764_v42 }
0x1291   :  { %v2872_v54 = vsel %vm159_vm6, %v2868_v61, 0.0  ;;  %3718 = vmatprep.subr.bf16.mxu1 %v3924_v2 }
0x1292   :  { %2873 = vadd.xlane.f32.xlu1 %v2872_v54 }
0x12a3   :  { %3001 = vrot.lane.b32.xlu1 %v3763_v9, %s3930_s26 }
0x12a7   :  { %3005 = vrot.lane.b32.xlu1 %v3765_v58, %s3930_s26 }
0x12ab   :  { %3007 = vrot.lane.b32.xlu1 %v3766_v10, %s3930_s26 }
0x131d   :  { %v2871_v7 = vpop.xlane.xlu0 %2870 }
0x131e   :  { %v2875_v17 = vmul.f32 0.03125, %v2871_v7 }
0x131f   :  { %v2874_v59 = vpop.xlane.xlu1 %2873 }
0x1320   :  { %v2877_v39 = vsub.f32 %v2867_v38, %v2875_v17  ;;  %v2876_v14 = vmul.f32 0.03125, %v2874_v59 }
0x1322   :  { %v2878_v16 = vsub.f32 %v2868_v61, %v2876_v14  ;;  %v2879_v8 = vmul.f32 %v2877_v39, %v2877_v39  ;;  %v2990_v14 = vrot.slane %v4366_v44, %v1562_v57 }
0x1323   :  { %v3002_v37 = vpop.permute.xlu1 %3001 }
0x1324   :  { %v2881_v63 = vsel %vm159_vm6, %v2879_v8, 0.0  ;;  %v2880_v50 = vmul.f32 %v2878_v16, %v2878_v16  ;;  %3707 = vmatpush3.bf16.msra.mxu0 %v3002_v37 }
0x1325   :  { %2882 = vadd.xlane.f32.xlu0 %v2881_v63  ;;  %3708 = vmatprep.subr.bf16.mxu0 %v3924_v2 }
0x1326   :  { %v2884_v40 = vsel %vm159_vm6, %v2880_v50, 0.0 }
0x1327   :  { %v3006_v24 = vpop.permute.xlu1 %3005 }
0x1329   :  { %2885 = vadd.xlane.f32.xlu0 %v2884_v40 }
0x132b   :  { %v3008_v6 = vpop.permute.xlu1 %3007 }
0x133f   :  { %3003 = vrot.lane.b32.xlu0 %v3764_v42, %s3930_s26 }
0x13b2   :  { %v2883_v19 = vpop.xlane.xlu0 %2882 }
0x13b3   :  { %v2887_v62 = vmul.f32 0.03125, %v2883_v19 }
0x13b5   :  { %v2889_v12 = vadd.f32 1e-12, %v2887_v62 }
0x13b6   :  { %v2886_v18 = vpop.xlane.xlu0 %2885 }
0x13b7   :  { %3849 = vrsqrt.f32 %v2889_v12  ;;  %v2888_v21 = vmul.f32 0.03125, %v2886_v18 }
0x13b9   :  { %v2890_v23 = vadd.f32 1e-12, %v2888_v21 }
0x13ba   :  { %v3004_v4 = vpop.permute.xlu0 %3003 }
0x13bb   :  { %3851 = vrsqrt.f32 %v2890_v23  ;;  %3709 = vmatpush3.bf16.msra.mxu0 %v3004_v4  ;;  %v3870_v4 = vld [vmem:[%s4674_s4 + $0x8] sm:$0xff]  ;;  %s3932_s4 = smov [#allocation5]  }
0x13bc   :  { %3710 = vmatprep.subr.bf16.mxu0 %v3924_v2 }
0x13bf   :  { %3711 = vmatpush3.bf16.msra.mxu0 %v3006_v24  ;;  %v3088_v24 = vrot.slane %v3870_v4, %v1661_v22 }
0x13c0   :  { %3712 = vmatprep.subr.bf16.mxu0 %v3924_v2 }
0x13c1   :  { %v3850_v28 = vpop.eup %3849 }
0x13c2   :  { %v2893_v13 = vmul.f32 %v3850_v28, %v2877_v39 }
0x13c3   :  { %3713 = vmatpush3.bf16.msra.mxu0 %v3008_v6 }
0x13c4   :  { %v2899_v31 = vmul.f32 %v2898_v29, %v2893_v13 }
0x13c5   :  { %v3852_v46 = vpop.eup %3851 }
0x13c6   :  { %v2894_v53 = vmul.f32 %v3852_v46, %v2878_v16  ;;  %v2905_v33 = vadd.f32 %v2904_v1, %v2899_v31  ;;  %v3767_v46 = vld [vmem:[%s4673_s3] sm:$0xff]   ;;  %v3768_v31 = vld [vmem:[%s4673_s3 + $0x8] sm:$0xff]  }
0x13c8   :  { %v2900_v5 = vmul.f32 %v2898_v29, %v2894_v53 }
0x13ca   :  { %v2906_v25 = vadd.f32 %v2904_v1, %v2900_v5 }
0x13cc   :  { %v2907_v27 = vpack.c.bf16 %v2906_v25, %v2905_v33 }
0x13ce   :  { %3703 = vmatmul.mubr.msk.bf16.vlgmr.msra.gmra.mrb[92].mxu1 %vm159_vm6, %v2907_v27 }
0x13cf   :  { %3722 = vmatprep.mubr.msk.bf16.mxu1 %vm3925_vm0, %v3924_v2  ;;  %3719 = vmatpush3.bf16.msra.mxu1 %v3767_v46 }
0x13d0   :  { %3720 = vmatprep.subr.bf16.mxu1 %v3924_v2 }
0x13d3   :  { %3721 = vmatpush3.bf16.msra.mxu1 %v3768_v31 }
0x14a1   :  { %v2961_v36 = vpop.f32.mrb[92].mxu1 }
0x14a2   :  { %v2962_v43 = vadd.f32 %v2961_v36, %v2911_v35  ;;  %v3704_v45 = vpop.f32.mrb[93].mxu1 }
0x14a3   :  { %v2964_v47 = vpop.f32.mrb[94].mxu1 }
0x14a4   :  { %v2970_v48 = vmul.f32 0.044715, %v2962_v43  ;;  %v2965_v51 = vadd.f32 %v2964_v47, %v2911_v35  ;;  %v3705_v55 = vpop.f32.mrb[95].mxu1  ;;  %v2968_v61 = vmul.f32 0.5, %v2962_v43 }
0x14a5   :  { %v3871_v55 = vld [vmem:[%s4675_s5] sm:$0x7]  ;;  %s3187_s5 = sshll.u32 %s3932_s4, 4  ;;  %s3188_s5 = int_to_ptr.vmem [resolvable:$true] %s3187_s5 }
0x14a6   :  { %v2972_v60 = vmul.f32 %v2970_v48, %v2962_v43  ;;  %v2971_v52 = vmul.f32 0.044715, %v2965_v51  ;;  %v2969_v54 = vmul.f32 0.5, %v2965_v51  ;;  %s3894_s16 = scalar_lea.vmem %s3188_s5, 256  ;;  %p3899_p9 = scmp.lt.s32.totalorder %s3188_s5, %s3188_s5 }
0x14a7   :  { %p3895_p8 = scmp.ne.s32.totalorder %s3188_s5, %s3894_s16  ;;  %p3900_p10 = scmp.lt.s32.totalorder %s3894_s16, %s3894_s16 }
0x14a8   :  { %v2974_v56 = vmul.f32 %v2972_v60, %v2962_v43  ;;  %v2973_v15 = vmul.f32 %v2971_v52, %v2965_v51  ;;  %v3105_v60 = vrot.slane %v3871_v55, %v4316_v26 }
0x14a9   :  { %p3901_p11 = por %p3900_p10, %p3899_p9 }
0x14aa   :  { %v2976_v20 = vadd.f32 %v2974_v56, %v2962_v43  ;;  %v2975_v0 = vmul.f32 %v2973_v15, %v2965_v51  ;;  %v3094_v43 = vrot.slane %v3870_v4, %v1667_v32 }
0x14ab   :  { %p3902_p12 = pnand %p3901_p11, %p3895_p8 }
0x14ac   :  { %v2978_v34 = vmul.f32 0.7978846, %v2976_v20  ;;  %v2977_v49 = vadd.f32 %v2975_v0, %v2965_v51 }
0x14ae   :  { %3853 = vtanh.f32 %v2978_v34  ;;  %v2979_v30 = vmul.f32 0.7978846, %v2977_v49 }
0x14b0   :  { %3855 = vtanh.f32 %v2979_v30 }
0x14b8   :  { %v3854_v41 = vpop.eup %3853 }
0x14b9   :  { %v2982_v38 = vadd.f32 1.0, %v3854_v41 }
0x14ba   :  { %v3856_v11 = vpop.eup %3855 }
0x14bb   :  { %v2983_v7 = vadd.f32 1.0, %v3856_v11  ;;  %v2984_v17 = vmul.f32 %v2982_v38, %v2968_v61 }
0x14bd   :  { %v2985_v59 = vmul.f32 %v2983_v7, %v2969_v54 }
0x14bf   :  { %v2986_v39 = vpack.c.bf16 %v2985_v59, %v2984_v17 }
0x14c1   :  { %3715 = vmatmul.mubr.msk.bf16.vlgmr.msra.gmra.mrb[88].mxu0 %vm1586_vm9, %v2986_v39 }
0x1594   :  { %v3050_v16 = vpop.f32.mrb[88].mxu0 }
0x1595   :  { %v3051_v8 = vadd.f32 %v3050_v16, %v2990_v14  ;;  %v3716_v63 = vpop.f32.mrb[89].mxu0 }
0x1596   :  { %v3053_v50 = vpop.f32.mrb[90].mxu0 }
0x1597   :  { %v3054_v40 = vadd.f32 %v3053_v50, %v2990_v14  ;;  %v3717_v9 = vpop.f32.mrb[91].mxu0  ;;  %v3057_v42 = vadd.f32 %v3051_v8, %v2905_v33 }
0x1599   :  { %v3058_v58 = vadd.f32 %v3054_v40, %v2906_v25  ;;  %v3059_v10 = vsel %vm159_vm6, %v3057_v42, 0.0 }
0x159a   :  { %3060 = vadd.xlane.f32.xlu0 %v3059_v10 }
0x159b   :  { %v3062_v19 = vsel %vm159_vm6, %v3058_v58, 0.0 }
0x159c   :  { %3063 = vadd.xlane.f32.xlu1 %v3062_v19 }
0x1627   :  { %v3061_v62 = vpop.xlane.xlu0 %3060 }
0x1628   :  { %v3065_v12 = vmul.f32 0.03125, %v3061_v62 }
0x1629   :  { %v3064_v18 = vpop.xlane.xlu1 %3063 }
0x162a   :  { %v3067_v21 = vsub.f32 %v3057_v42, %v3065_v12  ;;  %v3066_v23 = vmul.f32 0.03125, %v3064_v18 }
0x162c   :  { %v3068_v57 = vsub.f32 %v3058_v58, %v3066_v23  ;;  %v3069_v44 = vmul.f32 %v3067_v21, %v3067_v21 }
0x162e   :  { %v3071_v28 = vsel %vm159_vm6, %v3069_v44, 0.0  ;;  %v3070_v29 = vmul.f32 %v3068_v57, %v3068_v57 }
0x162f   :  { %3072 = vadd.xlane.f32.xlu0 %v3071_v28 }
0x1630   :  { %v3074_v13 = vsel %vm159_vm6, %v3070_v29, 0.0 }
0x1633   :  { %3075 = vadd.xlane.f32.xlu0 %v3074_v13 }
0x16bc   :  { %v3073_v53 = vpop.xlane.xlu0 %3072 }
0x16bd   :  { %v3077_v1 = vmul.f32 0.03125, %v3073_v53 }
0x16bf   :  { %v3079_v5 = vadd.f32 1e-12, %v3077_v1 }
0x16c0   :  { %v3076_v33 = vpop.xlane.xlu0 %3075 }
0x16c1   :  { %3857 = vrsqrt.f32 %v3079_v5  ;;  %v3078_v25 = vmul.f32 0.03125, %v3076_v33 }
0x16c3   :  { %v3080_v27 = vadd.f32 1e-12, %v3078_v25 }
0x16c5   :  { %3859 = vrsqrt.f32 %v3080_v27 }
0x16cb   :  { %v3858_v37 = vpop.eup %3857 }
0x16cc   :  { %v3083_v6 = vmul.f32 %v3858_v37, %v3067_v21 }
0x16ce   :  { %v3089_v2 = vmul.f32 %v3088_v24, %v3083_v6 }
0x16cf   :  { %v3860_v35 = vpop.eup %3859 }
0x16d0   :  { %v3084_v36 = vmul.f32 %v3860_v35, %v3068_v57  ;;  %v3095_v47 = vadd.f32 %v3094_v43, %v3089_v2 }
0x16d2   :  { %v3090_v45 = vmul.f32 %v3088_v24, %v3084_v36 }
0x16d4   :  { %v3096_v48 = vadd.f32 %v3094_v43, %v3090_v45 }
0x16d6   :  { %v3097_v51 = vpack.c.bf16 %v3096_v48, %v3095_v47 }
0x16d8   :  { %3723 = vmatmul.mubr.msk.bf16.vlgmr.msra.gmra.mrb[96].mxu1 %vm159_vm6, %v3097_v51 }
0x17ab   :  { %v3155_v22 = vpop.f32.mrb[96].mxu1 }
0x17ac   :  { %v3156_v52 = vadd.f32 %v3155_v22, %v3105_v60  ;;  %v3724_v56 = vpop.f32.mrb[97].mxu1 }
0x17ad   :  { %v3158_v15 = vpop.f32.mrb[98].mxu1 }
0x17ae   :  { %v3159_v20 = vadd.f32 %v3158_v15, %v3105_v60  ;;  %3162 = vmax.xlane.f32.xlu1 %v3156_v52  ;;  %v3725_v3 = vpop.f32.mrb[99].mxu1 }
0x17b0   :  { %3164 = vmax.xlane.f32.xlu0 %v3159_v20 }
0x183b   :  { %v3163_v32 = vpop.xlane.xlu1 %3162 }
0x183c   :  { %v3166_v0 = vsub.f32 %v3156_v52, %v3163_v32 }
0x183d   :  { %v3165_v34 = vpop.xlane.xlu0 %3164 }
0x183e   :  { %v3168_v49 = vmul.f32 1.442695, %v3166_v0  ;;  %v3167_v30 = vsub.f32 %v3159_v20, %v3165_v34 }
0x1840   :  { %3861 = vpow2.f32 %v3168_v49  ;;  %v3170_v41 = vmul.f32 1.442695, %v3167_v30 }
0x1842   :  { %3863 = vpow2.f32 %v3170_v41 }
0x184a   :  { %v3862_v38 = vpop.eup %3861 }
0x184b   :  { %3172 = vadd.xlane.f32.xlu1 %v3862_v38 }
0x184c   :  { %v3864_v11 = vpop.eup %3863 }
0x184d   :  { %3174 = vadd.xlane.f32.xlu0 %v3864_v11 }
0x18d8   :  { %v3173_v26 = vpop.xlane.xlu1 %3172 }
0x18d9   :  { %3865 = vrcp.f32 %v3173_v26 }
0x18da   :  { %v3175_v61 = vpop.xlane.xlu0 %3174 }
0x18db   :  { %3867 = vrcp.f32 %v3175_v61 }
0x18e3   :  { %v3866_v54 = vpop.eup %3865 }
0x18e4   :  { %v3177_v7 = vmul.f32 %v3866_v54, %v3862_v38 }
0x18e5   :  { %v3868_v17 = vpop.eup %3867 }
0x18e6   :  { %v3179_v59 = vmul.f32 %v3868_v17, %v3864_v11  ;;  %3180 = vst [vmem:[#allocation5] sm:$0xff] %v3177_v7 }
0x18e8   :  { %3181 = vst [vmem:[#allocation5 + $0x8] sm:$0xff] %v3179_v59 }
0x18e9   :  { %3905 = shalt.err (!%p3902_p12)
}
0x18ea   :  { %s3906_s19 = scalar_lea.hbm %s4676_s6, 256 }
0x18eb   :  { %p3907_p13 = scmp.ne.s32.totalorder %s4676_s6, %s3906_s19  ;;  %p3910_p0 = scmp.lt.u32.totalorder %s3906_s19, %s4676_s6 }
0x18ed   :  { %p3912_p1 = pnand %p3910_p0, %p3907_p13 }
0x18ef   :  { %3915 = shalt.err (!%p3912_p1)
}
0x18f0   :  { %3193 = dma.vmem_to_hbm [thread:$0]  %s3188_s5, 256, %s4676_s6, [#allocation4], %s3921_s7, %s3921_s7, %s3922_s8  }
0x18f1   :  { %3918 = dma.done.wait [#allocation4], 256  }
0x18f2   :  { %3919 = vsyncadd [#allocation4], 4294967040 }
0x18f3   :  { %3197 = vsyncpa [#allocation3], 1 }
0x18f4   :  { %3198 = vsyncpa [#allocation4], 1 }

</bundles_post_ra>
